<compile_context>
chip_gen: v7x
topology: tpu7x:2x2x1
jax: 0.10.0
libtpu: 0.0.40
codegen_flags: <defaults>
</compile_context>

<pallas_src>
import functools

import jax
import jax.numpy as jnp
from jax.experimental import pallas as pl
from jax.experimental.pallas import tpu as pltpu


def _down_kernel(xm_ref, xlo_ref, xhi_ref, w1_ref, s1_ref, b1_ref,
                 w2_ref, s2_ref, b2_ref, o_ref, pad1_ref, pad2_ref, *,
                 TH, Wo, Cin, Cout, Coutp, circular, slope, mm_dtype):
    t = pl.program_id(1)
    num_t = pl.num_programs(1)
    f32 = jnp.float32

    # ---- MaxPool2d(2): input block is (R, 2, Wo, 2*Cin) with the H pair on
    # the size-2 axis and the W pair on the lane halves -> 3 jnp.maximum. ----
    def pool2(xb):                                  # -> (R, Wo, Cin)
        m = jnp.maximum(xb[:, 0], xb[:, 1])
        return jnp.maximum(m[:, :, :Cin], m[:, :, Cin:]).astype(mm_dtype)

    # Pool straight into pad1's interior. pad1 rows [0,TH+4) hold pooled rows
    # [r0-2, r1+2); rows 0..1 / TH+2..TH+3 are the halo (zero at boundaries).
    pad1_ref[pl.ds(2, TH), pl.ds(1, Wo), :] = pool2(xm_ref[0])
    lo = pool2(xlo_ref[0])
    hi = pool2(xhi_ref[0])
    zh = jnp.zeros_like(lo)
    pad1_ref[pl.ds(0, 2), pl.ds(1, Wo), :] = jnp.where(t > 0, lo, zh)
    pad1_ref[pl.ds(TH + 2, 2), pl.ds(1, Wo), :] = jnp.where(t < num_t - 1, hi, zh)

    def fill_w_border(pad_ref, rows, ch):
        if circular:      # F.pad(..., mode='circular') on W
            pad_ref[:, pl.ds(0, 1), :] = pad_ref[:, pl.ds(Wo, 1), :]
            pad_ref[:, pl.ds(Wo + 1, 1), :] = pad_ref[:, pl.ds(1, 1), :]
        else:             # Conv2d(padding=1): zero W columns
            zc = jnp.zeros((rows, 1, ch), mm_dtype)
            pad_ref[:, pl.ds(0, 1), :] = zc
            pad_ref[:, pl.ds(Wo + 1, 1), :] = zc

    fill_w_border(pad1_ref, TH + 4, Cin)

    def conv3x3_bn_lrelu(pad_ref, w_ref, s_ref, b_ref, rows, cin):
        # 9 accumulated per-tap MXU matmuls; no materialized im2col patch.
        acc = jnp.zeros((rows * Wo, Coutp), f32)
        for k in range(9):
            kh, kw = k // 3, k % 3
            tap = pad_ref[pl.ds(kh, rows), pl.ds(kw, Wo), :]
            acc = acc + jnp.dot(tap.reshape(rows * Wo, cin), w_ref[k],
                                preferred_element_type=f32)
        y = acc * s_ref[...] + b_ref[...]            # folded BatchNorm (eval)
        y = jnp.where(y > 0, y, slope * y)           # LeakyReLU
        return y.reshape(rows, Wo, Coutp)

    # ---- conv1 -> straight into pad2's interior (no full temporary) --------
    h1 = conv3x3_bn_lrelu(pad1_ref, w1_ref, s1_ref, b1_ref, TH + 2, Cin)
    pad2_ref[:, pl.ds(1, Wo), :] = h1.astype(mm_dtype)

    # conv2's zero H-padding rows at the image boundary.
    @pl.when(t == 0)
    def _():
        pad2_ref[pl.ds(0, 1), :, :] = jnp.zeros((1, Wo + 2, Coutp), mm_dtype)

    @pl.when(t == num_t - 1)
    def _():
        pad2_ref[pl.ds(TH + 1, 1), :, :] = jnp.zeros((1, Wo + 2, Coutp), mm_dtype)

    fill_w_border(pad2_ref, TH + 2, Coutp)

    # ---- conv2 -> straight into the output block (only Cout lanes to HBM) --
    h2 = conv3x3_bn_lrelu(pad2_ref, w2_ref, s2_ref, b2_ref, TH, Coutp)
    o_ref[0] = h2[:, :, :Cout].astype(o_ref.dtype)


def _pick_row_tile(Ho, row_tile):
    if row_tile is not None:
        TH = int(row_tile)
        assert Ho % TH == 0, "row_tile must divide the pooled height"
        assert TH == Ho or TH % 2 == 0, "row_tile must be even when it tiles Ho"
        return TH
    for cand in range(min(Ho, 16), 1, -1):            # biggest even divisor <= 16
        if Ho % cand == 0 and cand % 2 == 0:
            return cand
    return Ho                                          # single tile fallback


def down_forward_nhwc(x_nhwc, params, *, circular=True, slope=0.01, eps=1e-5,
                      row_tile=None, matmul_in_bf16=None):
    """Fused MaxPool2d(2) + double_conv[_circular] (eval BN). NHWC in/out."""
    N, H, W, Cin = x_nhwc.shape
    if (H % 2) or (W % 2):                             # MaxPool2d(2) floors odd dims
        x_nhwc = x_nhwc[:, :(H // 2) * 2, :(W // 2) * 2, :]
        H, W = (H // 2) * 2, (W // 2) * 2
    Ho, Wo = H // 2, W // 2
    assert Ho >= 2, "pooled height must be >= 2"
    Cout = params["w1"].shape[0]
    Coutp = ((Cout + 127) // 128) * 128                # lane-dense VMEM channel dim

    if matmul_in_bf16 is None:
        matmul_in_bf16 = x_nhwc.dtype == jnp.bfloat16
    mm_dtype = jnp.bfloat16 if matmul_in_bf16 else jnp.float32

    TH = _pick_row_tile(Ho, row_tile)
    T = Ho // TH

    # Free (metadata-only) reshape: (N,H,W,Cin) -> (N,Ho,2,Wo,2*Cin); the 2x2
    # pool window becomes the size-2 axis plus the lane pair. No HBM pass.
    x = x_nhwc.reshape(N, Ho, 2, Wo, 2 * Cin)

    def fold(w, cb, gamma, beta, mean, var, cin_pad):
        cout, cin = w.shape[0], w.shape[1]
        wk = jnp.transpose(w, (2, 3, 1, 0)).reshape(9, cin, cout)   # (kh*3+kw, cin, cout)
        wp = jnp.zeros((9, cin_pad, Coutp), mm_dtype)
        wp = wp.at[:, :cin, :cout].set(wk.astype(mm_dtype))
        scale = gamma / jnp.sqrt(var + eps)            # fold BN (eval) + conv bias
        bias = beta + (cb - mean) * scale
        sp = jnp.zeros((1, Coutp), jnp.float32).at[0, :cout].set(scale.astype(jnp.float32))
        bp = jnp.zeros((1, Coutp), jnp.float32).at[0, :cout].set(bias.astype(jnp.float32))
        return wp, sp, bp

    w1, s1, b1 = fold(params["w1"], params["cb1"], params["g1"], params["be1"],
                      params["m1"], params["v1"], cin_pad=Cin)
    w2, s2, b2 = fold(params["w2"], params["cb2"], params["g2"], params["be2"],
                      params["m2"], params["v2"], cin_pad=Coutp)

    # vmem_limit from the per-tile footprint and the chip's actual capacity.
    mm_b = 2 if matmul_in_bf16 else 4
    x_b = x_nhwc.dtype.itemsize
    est = (2 * (2 * TH + 8) * Wo * 2 * Cin * x_b       # pooled-input blocks (double-buf)
           + 2 * TH * Wo * Cout * x_b                  # output block (double-buf)
           + 2 * 9 * (Cin + Coutp) * Coutp * mm_b      # weights (double-buf)
           + 8 * Coutp * 4                             # scale / bias
           + (TH + 4) * (Wo + 2) * Cin * mm_b          # pad1 scratch
           + (TH + 2) * (Wo + 2) * Coutp * mm_b        # pad2 scratch
           + 2 * (TH + 2) * Wo * Coutp * 4)            # live f32 accumulators
    try:
        cap = int(getattr(pltpu.get_tpu_info(), "vmem_capacity_bytes", 64 * 2**20))
    except Exception:
        cap = 64 * 2**20
    vmem_limit = int(min(max(4 * est, 16 * 2**20), cap * 3 // 4))

    kernel = functools.partial(
        _down_kernel, TH=TH, Wo=Wo, Cin=Cin, Cout=Cout, Coutp=Coutp,
        circular=circular, slope=slope, mm_dtype=mm_dtype)

    # Halo pooled rows (2 per side) come from the same array with a clamped
    # block index; boundary tiles zero them in-kernel.
    halo_lo = lambda n, t: (n, jnp.maximum(t * (TH // 2) - 1, 0), 0, 0, 0)
    halo_hi = lambda n, t: (n, jnp.minimum((t + 1) * (TH // 2), Ho // 2 - 1), 0, 0, 0)

    out = pl.pallas_call(
        kernel,
        out_shape=jax.ShapeDtypeStruct((N, Ho, Wo, Cout), x_nhwc.dtype),
        grid_spec=pltpu.PrefetchScalarGridSpec(
            num_scalar_prefetch=0,
            grid=(N, T),
            in_specs=[
                pl.BlockSpec((1, TH, 2, Wo, 2 * Cin), lambda n, t: (n, t, 0, 0, 0)),
                pl.BlockSpec((1, 2, 2, Wo, 2 * Cin), halo_lo),
                pl.BlockSpec((1, 2, 2, Wo, 2 * Cin), halo_hi),
                pl.BlockSpec((9, Cin, Coutp), lambda n, t: (0, 0, 0)),
                pl.BlockSpec((1, Coutp), lambda n, t: (0, 0)),
                pl.BlockSpec((1, Coutp), lambda n, t: (0, 0)),
                pl.BlockSpec((9, Coutp, Coutp), lambda n, t: (0, 0, 0)),
                pl.BlockSpec((1, Coutp), lambda n, t: (0, 0)),
                pl.BlockSpec((1, Coutp), lambda n, t: (0, 0)),
            ],
            out_specs=pl.BlockSpec((1, TH, Wo, Cout), lambda n, t: (n, t, 0, 0)),
            scratch_shapes=[
                pltpu.VMEM((TH + 4, Wo + 2, Cin), mm_dtype),     # pooled + halo, W-padded
                pltpu.VMEM((TH + 2, Wo + 2, Coutp), mm_dtype),   # conv1 output, W-padded
            ],
        ),
        compiler_params=pltpu.CompilerParams(
            dimension_semantics=("parallel", "parallel"),
            vmem_limit_bytes=vmem_limit,
        ),
    )(x, x, x, w1, s1, b1, w2, s2, b2)
    return out


def down_forward(x_nchw, params, **kwargs):
    """NCHW wrapper for parity with the PyTorch module.

    NHWC pipelines should call down_forward_nhwc directly and skip both
    boundary transposes."""
    y = down_forward_nhwc(jnp.transpose(x_nchw, (0, 2, 3, 1)), params, **kwargs)
    return jnp.transpose(y, (0, 3, 1, 2))


def ref_down(x_nchw, params, *, circular=True, slope=0.01, eps=1e-5):
    """Pure-JAX reference (mirrors the PyTorch forward, eval-mode BN)."""
    N, C, H, W = x_nchw.shape
    h = x_nchw.reshape(N, C, H // 2, 2, W // 2, 2).max(axis=(3, 5))

    def block(x, w, cb, gamma, beta, mean, var):
        if circular:
            x = jnp.pad(x, ((0, 0), (0, 0), (0, 0), (1, 1)), mode="wrap")
            pad = ((1, 1), (0, 0))
        else:
            pad = ((1, 1), (1, 1))
        y = jax.lax.conv_general_dilated(
            x, w, window_strides=(1, 1), padding=pad,
            dimension_numbers=("NCHW", "OIHW", "NCHW"))
        y = y + cb[None, :, None, None]
        y = (y - mean[None, :, None, None]) / jnp.sqrt(var[None, :, None, None] + eps)
        y = y * gamma[None, :, None, None] + beta[None, :, None, None]
        return jnp.where(y > 0, y, slope * y)

    h = block(h, params["w1"], params["cb1"], params["g1"], params["be1"],
              params["m1"], params["v1"])
    h = block(h, params["w2"], params["cb2"], params["g2"], params["be2"],
              params["m2"], params["v2"])
    return h


if __name__ == "__main__":
    key = jax.random.PRNGKey(0)
    N, Cin, Cout, H, W = 2, 4, 8, 16, 16
    ks = jax.random.split(key, 13)

    params = {
        "w1": 0.1 * jax.random.normal(ks[0], (Cout, Cin, 3, 3), jnp.float32),
        "cb1": 0.1 * jax.random.normal(ks[1], (Cout,), jnp.float32),
        "g1": 1.0 + 0.1 * jax.random.normal(ks[2], (Cout,), jnp.float32),
        "be1": 0.1 * jax.random.normal(ks[3], (Cout,), jnp.float32),
        "m1": 0.1 * jax.random.normal(ks[4], (Cout,), jnp.float32),
        "v1": 1.0 + 0.1 * jnp.abs(jax.random.normal(ks[5], (Cout,), jnp.float32)),
        "w2": 0.1 * jax.random.normal(ks[6], (Cout, Cout, 3, 3), jnp.float32),
        "cb2": 0.1 * jax.random.normal(ks[7], (Cout,), jnp.float32),
        "g2": 1.0 + 0.1 * jax.random.normal(ks[8], (Cout,), jnp.float32),
        "be2": 0.1 * jax.random.normal(ks[9], (Cout,), jnp.float32),
        "m2": 0.1 * jax.random.normal(ks[10], (Cout,), jnp.float32),
        "v2": 1.0 + 0.1 * jnp.abs(jax.random.normal(ks[11], (Cout,), jnp.float32)),
    }
    x = jax.random.normal(ks[12], (N, Cin, H, W), jnp.float32)

    # f32 MXU path: circular / zero padding, single tile and 2-way row tiling.
    for circ in (True, False):
        for rt in (None, 4):
            out = jax.block_until_ready(
                down_forward(x, params, circular=circ, row_tile=rt))
            ref = jax.block_until_ready(ref_down(x, params, circular=circ))
            assert out.shape == (N, Cout, H // 2, W // 2), out.shape
            err = float(jnp.max(jnp.abs(out - ref)))
            assert jnp.allclose(out, ref, atol=1e-4, rtol=1e-4), (circ, rt, err)

    # bf16 MXU path (f32 accumulation) -- looser tolerance vs the f32 reference.
    out_bf16 = jax.block_until_ready(
        down_forward(x, params, circular=True, row_tile=4, matmul_in_bf16=True))
    ref = jax.block_until_ready(ref_down(x, params, circular=True))
    err = float(jnp.max(jnp.abs(out_bf16 - ref)))
    assert jnp.allclose(out_bf16, ref, atol=5e-2, rtol=5e-2), err

    print("KERNEL_OK")
</pallas_src>

<mosaic_0001>
module attributes {stable_mosaic.version = 11 : i64} {
  func.func @_down_kernel(%arg0: i32, %arg1: i32, %arg2: memref<1x8x2x8x8xf32, #tpu.memory_space<vmem>>, %arg3: memref<1x2x2x8x8xf32, #tpu.memory_space<vmem>>, %arg4: memref<1x2x2x8x8xf32, #tpu.memory_space<vmem>>, %arg5: memref<9x4x128xf32, #tpu.memory_space<vmem>>, %arg6: memref<1x128xf32, #tpu.memory_space<vmem>>, %arg7: memref<1x128xf32, #tpu.memory_space<vmem>>, %arg8: memref<9x128x128xf32, #tpu.memory_space<vmem>>, %arg9: memref<1x128xf32, #tpu.memory_space<vmem>>, %arg10: memref<1x128xf32, #tpu.memory_space<vmem>>, %arg11: memref<1x8x8x8xf32, #tpu.memory_space<vmem>>, %arg12: memref<12x10x4xf32, #tpu.memory_space<vmem>>, %arg13: memref<10x10x128xf32, #tpu.memory_space<vmem>>) attributes {dimension_semantics = [#tpu.dimension_semantics<parallel>, #tpu.dimension_semantics<parallel>], iteration_bounds = array<i64: 2, 1>, scalar_prefetch = 0 : i64, scratch_operands = 2 : i64, tpu.core_type = #tpu.core_type<tc>, window_params = [{transform_indices = @transform_0, window_bounds = array<i64: 1, 8, 2, 8, 8>}, {transform_indices = @transform_1, window_bounds = array<i64: 1, 2, 2, 8, 8>}, {transform_indices = @transform_2, window_bounds = array<i64: 1, 2, 2, 8, 8>}, {pipeline_mode = #tpu.pipeline_mode<synchronous>, transform_indices = @transform_3, window_bounds = array<i64: 9, 4, 128>}, {pipeline_mode = #tpu.pipeline_mode<synchronous>, transform_indices = @transform_4, window_bounds = array<i64: 1, 128>}, {pipeline_mode = #tpu.pipeline_mode<synchronous>, transform_indices = @transform_5, window_bounds = array<i64: 1, 128>}, {pipeline_mode = #tpu.pipeline_mode<synchronous>, transform_indices = @transform_6, window_bounds = array<i64: 9, 128, 128>}, {pipeline_mode = #tpu.pipeline_mode<synchronous>, transform_indices = @transform_7, window_bounds = array<i64: 1, 128>}, {pipeline_mode = #tpu.pipeline_mode<synchronous>, transform_indices = @transform_8, window_bounds = array<i64: 1, 128>}, {transform_indices = @transform_9, window_bounds = array<i64: 1, 8, 8, 8>}]} {
    %c0 = arith.constant 0 : index
    %c0_0 = arith.constant 0 : index
    %c0_1 = arith.constant 0 : index
    %c0_2 = arith.constant 0 : index
    %c0_3 = arith.constant 0 : index
    %0 = vector.load %arg2[%c0, %c0_0, %c0_1, %c0_2, %c0_3] : memref<1x8x2x8x8xf32, #tpu.memory_space<vmem>>, vector<1x8x2x8x8xf32>
    %1 = vector.shape_cast %0 : vector<1x8x2x8x8xf32> to vector<8x2x8x8xf32>
    %2 = vector.extract_strided_slice %1 {offsets = [0, 0, 0, 0], sizes = [8, 1, 8, 8], strides = [1, 1, 1, 1]} : vector<8x2x8x8xf32> to vector<8x1x8x8xf32>
    %3 = vector.shape_cast %2 : vector<8x1x8x8xf32> to vector<8x8x8xf32>
    %4 = vector.extract_strided_slice %1 {offsets = [0, 1, 0, 0], sizes = [8, 1, 8, 8], strides = [1, 1, 1, 1]} : vector<8x2x8x8xf32> to vector<8x1x8x8xf32>
    %5 = vector.shape_cast %4 : vector<8x1x8x8xf32> to vector<8x8x8xf32>
    %6 = arith.maximumf %3, %5 : vector<8x8x8xf32>
    %7 = vector.extract_strided_slice %6 {offsets = [0, 0, 0], sizes = [8, 8, 4], strides = [1, 1, 1]} : vector<8x8x8xf32> to vector<8x8x4xf32>
    %8 = vector.extract_strided_slice %6 {offsets = [0, 0, 4], sizes = [8, 8, 4], strides = [1, 1, 1]} : vector<8x8x8xf32> to vector<8x8x4xf32>
    %9 = arith.maximumf %7, %8 : vector<8x8x4xf32>
    %c2 = arith.constant 2 : index
    %c1 = arith.constant 1 : index
    %c0_4 = arith.constant 0 : index
    %10 = vector.load %arg12[%c2, %c1, %c0_4] : memref<12x10x4xf32, #tpu.memory_space<vmem>>, vector<8x8x4xf32>
    tpu.vector_store %arg12[%c2, %c1, %c0_4], %9 {strides = array<i32>} : memref<12x10x4xf32, #tpu.memory_space<vmem>>, vector<8x8x4xf32>,
    %c0_5 = arith.constant 0 : index
    %c0_6 = arith.constant 0 : index
    %c0_7 = arith.constant 0 : index
    %c0_8 = arith.constant 0 : index
    %c0_9 = arith.constant 0 : index
    %11 = vector.load %arg3[%c0_5, %c0_6, %c0_7, %c0_8, %c0_9] : memref<1x2x2x8x8xf32, #tpu.memory_space<vmem>>, vector<1x2x2x8x8xf32>
    %12 = vector.shape_cast %11 : vector<1x2x2x8x8xf32> to vector<2x2x8x8xf32>
    %13 = vector.extract_strided_slice %12 {offsets = [0, 0, 0, 0], sizes = [2, 1, 8, 8], strides = [1, 1, 1, 1]} : vector<2x2x8x8xf32> to vector<2x1x8x8xf32>
    %14 = vector.shape_cast %13 : vector<2x1x8x8xf32> to vector<2x8x8xf32>
    %15 = vector.extract_strided_slice %12 {offsets = [0, 1, 0, 0], sizes = [2, 1, 8, 8], strides = [1, 1, 1, 1]} : vector<2x2x8x8xf32> to vector<2x1x8x8xf32>
    %16 = vector.shape_cast %15 : vector<2x1x8x8xf32> to vector<2x8x8xf32>
    %17 = arith.maximumf %14, %16 : vector<2x8x8xf32>
    %18 = vector.extract_strided_slice %17 {offsets = [0, 0, 0], sizes = [2, 8, 4], strides = [1, 1, 1]} : vector<2x8x8xf32> to vector<2x8x4xf32>
    %19 = vector.extract_strided_slice %17 {offsets = [0, 0, 4], sizes = [2, 8, 4], strides = [1, 1, 1]} : vector<2x8x8xf32> to vector<2x8x4xf32>
    %20 = arith.maximumf %18, %19 : vector<2x8x4xf32>
    %c0_10 = arith.constant 0 : index
    %c0_11 = arith.constant 0 : index
    %c0_12 = arith.constant 0 : index
    %c0_13 = arith.constant 0 : index
    %c0_14 = arith.constant 0 : index
    %21 = vector.load %arg4[%c0_10, %c0_11, %c0_12, %c0_13, %c0_14] : memref<1x2x2x8x8xf32, #tpu.memory_space<vmem>>, vector<1x2x2x8x8xf32>
    %22 = vector.shape_cast %21 : vector<1x2x2x8x8xf32> to vector<2x2x8x8xf32>
    %23 = vector.extract_strided_slice %22 {offsets = [0, 0, 0, 0], sizes = [2, 1, 8, 8], strides = [1, 1, 1, 1]} : vector<2x2x8x8xf32> to vector<2x1x8x8xf32>
    %24 = vector.shape_cast %23 : vector<2x1x8x8xf32> to vector<2x8x8xf32>
    %25 = vector.extract_strided_slice %22 {offsets = [0, 1, 0, 0], sizes = [2, 1, 8, 8], strides = [1, 1, 1, 1]} : vector<2x2x8x8xf32> to vector<2x1x8x8xf32>
    %26 = vector.shape_cast %25 : vector<2x1x8x8xf32> to vector<2x8x8xf32>
    %27 = arith.maximumf %24, %26 : vector<2x8x8xf32>
    %28 = vector.extract_strided_slice %27 {offsets = [0, 0, 0], sizes = [2, 8, 4], strides = [1, 1, 1]} : vector<2x8x8xf32> to vector<2x8x4xf32>
    %29 = vector.extract_strided_slice %27 {offsets = [0, 0, 4], sizes = [2, 8, 4], strides = [1, 1, 1]} : vector<2x8x8xf32> to vector<2x8x4xf32>
    %30 = arith.maximumf %28, %29 : vector<2x8x4xf32>
    %cst = arith.constant 0.000000e+00 : f32
    %31 = vector.broadcast %cst : f32 to vector<2x8x4xf32>
    %c0_i32 = arith.constant 0 : i32
    %32 = arith.cmpi sgt, %arg1, %c0_i32 : i32
    %33 = arith.select %32, %20, %31 : vector<2x8x4xf32>
    %c0_15 = arith.constant 0 : index
    %c1_16 = arith.constant 1 : index
    %c0_17 = arith.constant 0 : index
    %34 = vector.load %arg12[%c0_15, %c1_16, %c0_17] : memref<12x10x4xf32, #tpu.memory_space<vmem>>, vector<2x8x4xf32>
    tpu.vector_store %arg12[%c0_15, %c1_16, %c0_17], %33 {strides = array<i32>} : memref<12x10x4xf32, #tpu.memory_space<vmem>>, vector<2x8x4xf32>,
    %c0_i32_18 = arith.constant 0 : i32
    %35 = arith.cmpi slt, %arg1, %c0_i32_18 : i32
    %36 = arith.select %35, %30, %31 : vector<2x8x4xf32>
    %c10 = arith.constant 10 : index
    %c1_19 = arith.constant 1 : index
    %c0_20 = arith.constant 0 : index
    %37 = vector.load %arg12[%c10, %c1_19, %c0_20] : memref<12x10x4xf32, #tpu.memory_space<vmem>>, vector<2x8x4xf32>
    tpu.vector_store %arg12[%c10, %c1_19, %c0_20], %36 {strides = array<i32>} : memref<12x10x4xf32, #tpu.memory_space<vmem>>, vector<2x8x4xf32>,
    %c0_21 = arith.constant 0 : index
    %c8 = arith.constant 8 : index
    %c0_22 = arith.constant 0 : index
    %38 = vector.load %arg12[%c0_21, %c8, %c0_22] : memref<12x10x4xf32, #tpu.memory_space<vmem>>, vector<12x1x4xf32>
    %c0_23 = arith.constant 0 : index
    %c0_24 = arith.constant 0 : index
    %c0_25 = arith.constant 0 : index
    %39 = vector.load %arg12[%c0_23, %c0_24, %c0_25] : memref<12x10x4xf32, #tpu.memory_space<vmem>>, vector<12x1x4xf32>
    tpu.vector_store %arg12[%c0_23, %c0_24, %c0_25], %38 {strides = array<i32>} : memref<12x10x4xf32, #tpu.memory_space<vmem>>, vector<12x1x4xf32>,
    %c0_26 = arith.constant 0 : index
    %c1_27 = arith.constant 1 : index
    %c0_28 = arith.constant 0 : index
    %40 = vector.load %arg12[%c0_26, %c1_27, %c0_28] : memref<12x10x4xf32, #tpu.memory_space<vmem>>, vector<12x1x4xf32>
    %c0_29 = arith.constant 0 : index
    %c9 = arith.constant 9 : index
    %c0_30 = arith.constant 0 : index
    %41 = vector.load %arg12[%c0_29, %c9, %c0_30] : memref<12x10x4xf32, #tpu.memory_space<vmem>>, vector<12x1x4xf32>
    tpu.vector_store %arg12[%c0_29, %c9, %c0_30], %40 {strides = array<i32>} : memref<12x10x4xf32, #tpu.memory_space<vmem>>, vector<12x1x4xf32>,
    %cst_31 = arith.constant 0.000000e+00 : f32
    %42 = vector.broadcast %cst_31 : f32 to vector<80x128xf32>
    %c0_32 = arith.constant 0 : index
    %c0_33 = arith.constant 0 : index
    %c0_34 = arith.constant 0 : index
    %43 = vector.load %arg12[%c0_32, %c0_33, %c0_34] : memref<12x10x4xf32, #tpu.memory_space<vmem>>, vector<10x8x4xf32>
    %44 = vector.shape_cast %43 : vector<10x8x4xf32> to vector<80x4xf32>
    %c0_35 = arith.constant 0 : index
    %c0_36 = arith.constant 0 : index
    %c0_37 = arith.constant 0 : index
    %45 = vector.load %arg5[%c0_35, %c0_36, %c0_37] : memref<9x4x128xf32, #tpu.memory_space<vmem>>, vector<1x4x128xf32>
    %46 = vector.shape_cast %45 : vector<1x4x128xf32> to vector<4x128xf32>
    %cst_38 = arith.constant dense<0.000000e+00> : vector<80x128xf32>
    %47 = tpu.matmul %44, %46, %cst_38 {dimension_numbers = #tpu.dot_dimension_numbers<[1], [0], [0], [1], [0, 0, 1, 1], [], []>} : vector<80x4xf32>, vector<4x128xf32>, vector<80x128xf32> -> vector<80x128xf32>
    %48 = arith.addf %42, %47 : vector<80x128xf32>
    %c0_39 = arith.constant 0 : index
    %c1_40 = arith.constant 1 : index
    %c0_41 = arith.constant 0 : index
    %49 = vector.load %arg12[%c0_39, %c1_40, %c0_41] : memref<12x10x4xf32, #tpu.memory_space<vmem>>, vector<10x8x4xf32>
    %50 = vector.shape_cast %49 : vector<10x8x4xf32> to vector<80x4xf32>
    %c1_42 = arith.constant 1 : index
    %c0_43 = arith.constant 0 : index
    %c0_44 = arith.constant 0 : index
    %51 = vector.load %arg5[%c1_42, %c0_43, %c0_44] : memref<9x4x128xf32, #tpu.memory_space<vmem>>, vector<1x4x128xf32>
    %52 = vector.shape_cast %51 : vector<1x4x128xf32> to vector<4x128xf32>
    %cst_45 = arith.constant dense<0.000000e+00> : vector<80x128xf32>
    %53 = tpu.matmul %50, %52, %cst_45 {dimension_numbers = #tpu.dot_dimension_numbers<[1], [0], [0], [1], [0, 0, 1, 1], [], []>} : vector<80x4xf32>, vector<4x128xf32>, vector<80x128xf32> -> vector<80x128xf32>
    %54 = arith.addf %48, %53 : vector<80x128xf32>
    %c0_46 = arith.constant 0 : index
    %c2_47 = arith.constant 2 : index
    %c0_48 = arith.constant 0 : index
    %55 = vector.load %arg12[%c0_46, %c2_47, %c0_48] : memref<12x10x4xf32, #tpu.memory_space<vmem>>, vector<10x8x4xf32>
    %56 = vector.shape_cast %55 : vector<10x8x4xf32> to vector<80x4xf32>
    %c2_49 = arith.constant 2 : index
    %c0_50 = arith.constant 0 : index
    %c0_51 = arith.constant 0 : index
    %57 = vector.load %arg5[%c2_49, %c0_50, %c0_51] : memref<9x4x128xf32, #tpu.memory_space<vmem>>, vector<1x4x128xf32>
    %58 = vector.shape_cast %57 : vector<1x4x128xf32> to vector<4x128xf32>
    %cst_52 = arith.constant dense<0.000000e+00> : vector<80x128xf32>
    %59 = tpu.matmul %56, %58, %cst_52 {dimension_numbers = #tpu.dot_dimension_numbers<[1], [0], [0], [1], [0, 0, 1, 1], [], []>} : vector<80x4xf32>, vector<4x128xf32>, vector<80x128xf32> -> vector<80x128xf32>
    %60 = arith.addf %54, %59 : vector<80x128xf32>
    %c1_53 = arith.constant 1 : index
    %c0_54 = arith.constant 0 : index
    %c0_55 = arith.constant 0 : index
    %61 = vector.load %arg12[%c1_53, %c0_54, %c0_55] : memref<12x10x4xf32, #tpu.memory_space<vmem>>, vector<10x8x4xf32>
    %62 = vector.shape_cast %61 : vector<10x8x4xf32> to vector<80x4xf32>
    %c3 = arith.constant 3 : index
    %c0_56 = arith.constant 0 : index
    %c0_57 = arith.constant 0 : index
    %63 = vector.load %arg5[%c3, %c0_56, %c0_57] : memref<9x4x128xf32, #tpu.memory_space<vmem>>, vector<1x4x128xf32>
    %64 = vector.shape_cast %63 : vector<1x4x128xf32> to vector<4x128xf32>
    %cst_58 = arith.constant dense<0.000000e+00> : vector<80x128xf32>
    %65 = tpu.matmul %62, %64, %cst_58 {dimension_numbers = #tpu.dot_dimension_numbers<[1], [0], [0], [1], [0, 0, 1, 1], [], []>} : vector<80x4xf32>, vector<4x128xf32>, vector<80x128xf32> -> vector<80x128xf32>
    %66 = arith.addf %60, %65 : vector<80x128xf32>
    %c1_59 = arith.constant 1 : index
    %c1_60 = arith.constant 1 : index
    %c0_61 = arith.constant 0 : index
    %67 = vector.load %arg12[%c1_59, %c1_60, %c0_61] : memref<12x10x4xf32, #tpu.memory_space<vmem>>, vector<10x8x4xf32>
    %68 = vector.shape_cast %67 : vector<10x8x4xf32> to vector<80x4xf32>
    %c4 = arith.constant 4 : index
    %c0_62 = arith.constant 0 : index
    %c0_63 = arith.constant 0 : index
    %69 = vector.load %arg5[%c4, %c0_62, %c0_63] : memref<9x4x128xf32, #tpu.memory_space<vmem>>, vector<1x4x128xf32>
    %70 = vector.shape_cast %69 : vector<1x4x128xf32> to vector<4x128xf32>
    %cst_64 = arith.constant dense<0.000000e+00> : vector<80x128xf32>
    %71 = tpu.matmul %68, %70, %cst_64 {dimension_numbers = #tpu.dot_dimension_numbers<[1], [0], [0], [1], [0, 0, 1, 1], [], []>} : vector<80x4xf32>, vector<4x128xf32>, vector<80x128xf32> -> vector<80x128xf32>
    %72 = arith.addf %66, %71 : vector<80x128xf32>
    %c1_65 = arith.constant 1 : index
    %c2_66 = arith.constant 2 : index
    %c0_67 = arith.constant 0 : index
    %73 = vector.load %arg12[%c1_65, %c2_66, %c0_67] : memref<12x10x4xf32, #tpu.memory_space<vmem>>, vector<10x8x4xf32>
    %74 = vector.shape_cast %73 : vector<10x8x4xf32> to vector<80x4xf32>
    %c5 = arith.constant 5 : index
    %c0_68 = arith.constant 0 : index
    %c0_69 = arith.constant 0 : index
    %75 = vector.load %arg5[%c5, %c0_68, %c0_69] : memref<9x4x128xf32, #tpu.memory_space<vmem>>, vector<1x4x128xf32>
    %76 = vector.shape_cast %75 : vector<1x4x128xf32> to vector<4x128xf32>
    %cst_70 = arith.constant dense<0.000000e+00> : vector<80x128xf32>
    %77 = tpu.matmul %74, %76, %cst_70 {dimension_numbers = #tpu.dot_dimension_numbers<[1], [0], [0], [1], [0, 0, 1, 1], [], []>} : vector<80x4xf32>, vector<4x128xf32>, vector<80x128xf32> -> vector<80x128xf32>
    %78 = arith.addf %72, %77 : vector<80x128xf32>
    %c2_71 = arith.constant 2 : index
    %c0_72 = arith.constant 0 : index
    %c0_73 = arith.constant 0 : index
    %79 = vector.load %arg12[%c2_71, %c0_72, %c0_73] : memref<12x10x4xf32, #tpu.memory_space<vmem>>, vector<10x8x4xf32>
    %80 = vector.shape_cast %79 : vector<10x8x4xf32> to vector<80x4xf32>
    %c6 = arith.constant 6 : index
    %c0_74 = arith.constant 0 : index
    %c0_75 = arith.constant 0 : index
    %81 = vector.load %arg5[%c6, %c0_74, %c0_75] : memref<9x4x128xf32, #tpu.memory_space<vmem>>, vector<1x4x128xf32>
    %82 = vector.shape_cast %81 : vector<1x4x128xf32> to vector<4x128xf32>
    %cst_76 = arith.constant dense<0.000000e+00> : vector<80x128xf32>
    %83 = tpu.matmul %80, %82, %cst_76 {dimension_numbers = #tpu.dot_dimension_numbers<[1], [0], [0], [1], [0, 0, 1, 1], [], []>} : vector<80x4xf32>, vector<4x128xf32>, vector<80x128xf32> -> vector<80x128xf32>
    %84 = arith.addf %78, %83 : vector<80x128xf32>
    %c2_77 = arith.constant 2 : index
    %c1_78 = arith.constant 1 : index
    %c0_79 = arith.constant 0 : index
    %85 = vector.load %arg12[%c2_77, %c1_78, %c0_79] : memref<12x10x4xf32, #tpu.memory_space<vmem>>, vector<10x8x4xf32>
    %86 = vector.shape_cast %85 : vector<10x8x4xf32> to vector<80x4xf32>
    %c7 = arith.constant 7 : index
    %c0_80 = arith.constant 0 : index
    %c0_81 = arith.constant 0 : index
    %87 = vector.load %arg5[%c7, %c0_80, %c0_81] : memref<9x4x128xf32, #tpu.memory_space<vmem>>, vector<1x4x128xf32>
    %88 = vector.shape_cast %87 : vector<1x4x128xf32> to vector<4x128xf32>
    %cst_82 = arith.constant dense<0.000000e+00> : vector<80x128xf32>
    %89 = tpu.matmul %86, %88, %cst_82 {dimension_numbers = #tpu.dot_dimension_numbers<[1], [0], [0], [1], [0, 0, 1, 1], [], []>} : vector<80x4xf32>, vector<4x128xf32>, vector<80x128xf32> -> vector<80x128xf32>
    %90 = arith.addf %84, %89 : vector<80x128xf32>
    %c2_83 = arith.constant 2 : index
    %c2_84 = arith.constant 2 : index
    %c0_85 = arith.constant 0 : index
    %91 = vector.load %arg12[%c2_83, %c2_84, %c0_85] : memref<12x10x4xf32, #tpu.memory_space<vmem>>, vector<10x8x4xf32>
    %92 = vector.shape_cast %91 : vector<10x8x4xf32> to vector<80x4xf32>
    %c8_86 = arith.constant 8 : index
    %c0_87 = arith.constant 0 : index
    %c0_88 = arith.constant 0 : index
    %93 = vector.load %arg5[%c8_86, %c0_87, %c0_88] : memref<9x4x128xf32, #tpu.memory_space<vmem>>, vector<1x4x128xf32>
    %94 = vector.shape_cast %93 : vector<1x4x128xf32> to vector<4x128xf32>
    %cst_89 = arith.constant dense<0.000000e+00> : vector<80x128xf32>
    %95 = tpu.matmul %92, %94, %cst_89 {dimension_numbers = #tpu.dot_dimension_numbers<[1], [0], [0], [1], [0, 0, 1, 1], [], []>} : vector<80x4xf32>, vector<4x128xf32>, vector<80x128xf32> -> vector<80x128xf32>
    %96 = arith.addf %90, %95 : vector<80x128xf32>
    %c0_90 = arith.constant 0 : index
    %c0_91 = arith.constant 0 : index
    %97 = vector.load %arg6[%c0_90, %c0_91] : memref<1x128xf32, #tpu.memory_space<vmem>>, vector<1x128xf32>
    %98 = vector.broadcast %97 : vector<1x128xf32> to vector<80x128xf32>
    %99 = arith.mulf %96, %98 : vector<80x128xf32>
    %c0_92 = arith.constant 0 : index
    %c0_93 = arith.constant 0 : index
    %100 = vector.load %arg7[%c0_92, %c0_93] : memref<1x128xf32, #tpu.memory_space<vmem>>, vector<1x128xf32>
    %101 = vector.broadcast %100 : vector<1x128xf32> to vector<80x128xf32>
    %102 = arith.addf %99, %101 : vector<80x128xf32>
    %cst_94 = arith.constant 0.000000e+00 : f32
    %103 = vector.broadcast %cst_94 : f32 to vector<80x128xf32>
    %104 = arith.cmpf ogt, %102, %103 : vector<80x128xf32>
    %cst_95 = arith.constant 0.00999999977 : f32
    %105 = vector.broadcast %cst_95 : f32 to vector<80x128xf32>
    %106 = arith.mulf %105, %102 : vector<80x128xf32>
    %107 = arith.select %104, %102, %106 : vector<80x128xi1>, vector<80x128xf32>
    %108 = vector.shape_cast %107 : vector<80x128xf32> to vector<10x8x128xf32>
    %c0_96 = arith.constant 0 : index
    %c1_97 = arith.constant 1 : index
    %c0_98 = arith.constant 0 : index
    %109 = vector.load %arg13[%c0_96, %c1_97, %c0_98] : memref<10x10x128xf32, #tpu.memory_space<vmem>>, vector<10x8x128xf32>
    tpu.vector_store %arg13[%c0_96, %c1_97, %c0_98], %108 {strides = array<i32>} : memref<10x10x128xf32, #tpu.memory_space<vmem>>, vector<10x8x128xf32>,
    %c0_i32_99 = arith.constant 0 : i32
    %110 = arith.cmpi eq, %arg1, %c0_i32_99 : i32
    %111 = arith.extui %110 : i1 to i32
    %c0_i32_100 = arith.constant 0 : i32
    %112 = arith.cmpi ne, %111, %c0_i32_100 : i32
    scf.if %112 {
      %cst_189 = arith.constant 0.000000e+00 : f32
      %191 = vector.broadcast %cst_189 : f32 to vector<1x10x128xf32>
      %c0_190 = arith.constant 0 : index
      %c0_191 = arith.constant 0 : index
      %c0_192 = arith.constant 0 : index
      %192 = vector.load %arg13[%c0_190, %c0_191, %c0_192] : memref<10x10x128xf32, #tpu.memory_space<vmem>>, vector<1x10x128xf32>
      tpu.vector_store %arg13[%c0_190, %c0_191, %c0_192], %191 {strides = array<i32>} : memref<10x10x128xf32, #tpu.memory_space<vmem>>, vector<1x10x128xf32>,
    } else {
    }
    %c0_i32_101 = arith.constant 0 : i32
    %113 = arith.cmpi eq, %arg1, %c0_i32_101 : i32
    %114 = arith.extui %113 : i1 to i32
    %c0_i32_102 = arith.constant 0 : i32
    %115 = arith.cmpi ne, %114, %c0_i32_102 : i32
    scf.if %115 {
      %cst_189 = arith.constant 0.000000e+00 : f32
      %191 = vector.broadcast %cst_189 : f32 to vector<1x10x128xf32>
      %c9_190 = arith.constant 9 : index
      %c0_191 = arith.constant 0 : index
      %c0_192 = arith.constant 0 : index
      %192 = vector.load %arg13[%c9_190, %c0_191, %c0_192] : memref<10x10x128xf32, #tpu.memory_space<vmem>>, vector<1x10x128xf32>
      tpu.vector_store %arg13[%c9_190, %c0_191, %c0_192], %191 {strides = array<i32>} : memref<10x10x128xf32, #tpu.memory_space<vmem>>, vector<1x10x128xf32>,
    } else {
    }
    %c0_103 = arith.constant 0 : index
    %c8_104 = arith.constant 8 : index
    %c0_105 = arith.constant 0 : index
    %116 = vector.load %arg13[%c0_103, %c8_104, %c0_105] : memref<10x10x128xf32, #tpu.memory_space<vmem>>, vector<10x1x128xf32>
    %c0_106 = arith.constant 0 : index
    %c0_107 = arith.constant 0 : index
    %c0_108 = arith.constant 0 : index
    %117 = vector.load %arg13[%c0_106, %c0_107, %c0_108] : memref<10x10x128xf32, #tpu.memory_space<vmem>>, vector<10x1x128xf32>
    tpu.vector_store %arg13[%c0_106, %c0_107, %c0_108], %116 {strides = array<i32>} : memref<10x10x128xf32, #tpu.memory_space<vmem>>, vector<10x1x128xf32>,
    %c0_109 = arith.constant 0 : index
    %c1_110 = arith.constant 1 : index
    %c0_111 = arith.constant 0 : index
    %118 = vector.load %arg13[%c0_109, %c1_110, %c0_111] : memref<10x10x128xf32, #tpu.memory_space<vmem>>, vector<10x1x128xf32>
    %c0_112 = arith.constant 0 : index
    %c9_113 = arith.constant 9 : index
    %c0_114 = arith.constant 0 : index
    %119 = vector.load %arg13[%c0_112, %c9_113, %c0_114] : memref<10x10x128xf32, #tpu.memory_space<vmem>>, vector<10x1x128xf32>
    tpu.vector_store %arg13[%c0_112, %c9_113, %c0_114], %118 {strides = array<i32>} : memref<10x10x128xf32, #tpu.memory_space<vmem>>, vector<10x1x128xf32>,
    %cst_115 = arith.constant 0.000000e+00 : f32
    %120 = vector.broadcast %cst_115 : f32 to vector<64x128xf32>
    %c0_116 = arith.constant 0 : index
    %c0_117 = arith.constant 0 : index
    %c0_118 = arith.constant 0 : index
    %121 = vector.load %arg13[%c0_116, %c0_117, %c0_118] : memref<10x10x128xf32, #tpu.memory_space<vmem>>, vector<8x8x128xf32>
    %122 = vector.shape_cast %121 : vector<8x8x128xf32> to vector<64x128xf32>
    %c0_119 = arith.constant 0 : index
    %c0_120 = arith.constant 0 : index
    %c0_121 = arith.constant 0 : index
    %123 = vector.load %arg8[%c0_119, %c0_120, %c0_121] : memref<9x128x128xf32, #tpu.memory_space<vmem>>, vector<1x128x128xf32>
    %124 = vector.shape_cast %123 : vector<1x128x128xf32> to vector<128x128xf32>
    %cst_122 = arith.constant dense<0.000000e+00> : vector<64x128xf32>
    %125 = tpu.matmul %122, %124, %cst_122 {dimension_numbers = #tpu.dot_dimension_numbers<[1], [0], [0], [1], [0, 0, 1, 1], [], []>} : vector<64x128xf32>, vector<128x128xf32>, vector<64x128xf32> -> vector<64x128xf32>
    %126 = arith.addf %120, %125 : vector<64x128xf32>
    %c0_123 = arith.constant 0 : index
    %c1_124 = arith.constant 1 : index
    %c0_125 = arith.constant 0 : index
    %127 = vector.load %arg13[%c0_123, %c1_124, %c0_125] : memref<10x10x128xf32, #tpu.memory_space<vmem>>, vector<8x8x128xf32>
    %128 = vector.shape_cast %127 : vector<8x8x128xf32> to vector<64x128xf32>
    %c1_126 = arith.constant 1 : index
    %c0_127 = arith.constant 0 : index
    %c0_128 = arith.constant 0 : index
    %129 = vector.load %arg8[%c1_126, %c0_127, %c0_128] : memref<9x128x128xf32, #tpu.memory_space<vmem>>, vector<1x128x128xf32>
    %130 = vector.shape_cast %129 : vector<1x128x128xf32> to vector<128x128xf32>
    %cst_129 = arith.constant dense<0.000000e+00> : vector<64x128xf32>
    %131 = tpu.matmul %128, %130, %cst_129 {dimension_numbers = #tpu.dot_dimension_numbers<[1], [0], [0], [1], [0, 0, 1, 1], [], []>} : vector<64x128xf32>, vector<128x128xf32>, vector<64x128xf32> -> vector<64x128xf32>
    %132 = arith.addf %126, %131 : vector<64x128xf32>
    %c0_130 = arith.constant 0 : index
    %c2_131 = arith.constant 2 : index
    %c0_132 = arith.constant 0 : index
    %133 = vector.load %arg13[%c0_130, %c2_131, %c0_132] : memref<10x10x128xf32, #tpu.memory_space<vmem>>, vector<8x8x128xf32>
    %134 = vector.shape_cast %133 : vector<8x8x128xf32> to vector<64x128xf32>
    %c2_133 = arith.constant 2 : index
    %c0_134 = arith.constant 0 : index
    %c0_135 = arith.constant 0 : index
    %135 = vector.load %arg8[%c2_133, %c0_134, %c0_135] : memref<9x128x128xf32, #tpu.memory_space<vmem>>, vector<1x128x128xf32>
    %136 = vector.shape_cast %135 : vector<1x128x128xf32> to vector<128x128xf32>
    %cst_136 = arith.constant dense<0.000000e+00> : vector<64x128xf32>
    %137 = tpu.matmul %134, %136, %cst_136 {dimension_numbers = #tpu.dot_dimension_numbers<[1], [0], [0], [1], [0, 0, 1, 1], [], []>} : vector<64x128xf32>, vector<128x128xf32>, vector<64x128xf32> -> vector<64x128xf32>
    %138 = arith.addf %132, %137 : vector<64x128xf32>
    %c1_137 = arith.constant 1 : index
    %c0_138 = arith.constant 0 : index
    %c0_139 = arith.constant 0 : index
    %139 = vector.load %arg13[%c1_137, %c0_138, %c0_139] : memref<10x10x128xf32, #tpu.memory_space<vmem>>, vector<8x8x128xf32>
    %140 = vector.shape_cast %139 : vector<8x8x128xf32> to vector<64x128xf32>
    %c3_140 = arith.constant 3 : index
    %c0_141 = arith.constant 0 : index
    %c0_142 = arith.constant 0 : index
    %141 = vector.load %arg8[%c3_140, %c0_141, %c0_142] : memref<9x128x128xf32, #tpu.memory_space<vmem>>, vector<1x128x128xf32>
    %142 = vector.shape_cast %141 : vector<1x128x128xf32> to vector<128x128xf32>
    %cst_143 = arith.constant dense<0.000000e+00> : vector<64x128xf32>
    %143 = tpu.matmul %140, %142, %cst_143 {dimension_numbers = #tpu.dot_dimension_numbers<[1], [0], [0], [1], [0, 0, 1, 1], [], []>} : vector<64x128xf32>, vector<128x128xf32>, vector<64x128xf32> -> vector<64x128xf32>
    %144 = arith.addf %138, %143 : vector<64x128xf32>
    %c1_144 = arith.constant 1 : index
    %c1_145 = arith.constant 1 : index
    %c0_146 = arith.constant 0 : index
    %145 = vector.load %arg13[%c1_144, %c1_145, %c0_146] : memref<10x10x128xf32, #tpu.memory_space<vmem>>, vector<8x8x128xf32>
    %146 = vector.shape_cast %145 : vector<8x8x128xf32> to vector<64x128xf32>
    %c4_147 = arith.constant 4 : index
    %c0_148 = arith.constant 0 : index
    %c0_149 = arith.constant 0 : index
    %147 = vector.load %arg8[%c4_147, %c0_148, %c0_149] : memref<9x128x128xf32, #tpu.memory_space<vmem>>, vector<1x128x128xf32>
    %148 = vector.shape_cast %147 : vector<1x128x128xf32> to vector<128x128xf32>
    %cst_150 = arith.constant dense<0.000000e+00> : vector<64x128xf32>
    %149 = tpu.matmul %146, %148, %cst_150 {dimension_numbers = #tpu.dot_dimension_numbers<[1], [0], [0], [1], [0, 0, 1, 1], [], []>} : vector<64x128xf32>, vector<128x128xf32>, vector<64x128xf32> -> vector<64x128xf32>
    %150 = arith.addf %144, %149 : vector<64x128xf32>
    %c1_151 = arith.constant 1 : index
    %c2_152 = arith.constant 2 : index
    %c0_153 = arith.constant 0 : index
    %151 = vector.load %arg13[%c1_151, %c2_152, %c0_153] : memref<10x10x128xf32, #tpu.memory_space<vmem>>, vector<8x8x128xf32>
    %152 = vector.shape_cast %151 : vector<8x8x128xf32> to vector<64x128xf32>
    %c5_154 = arith.constant 5 : index
    %c0_155 = arith.constant 0 : index
    %c0_156 = arith.constant 0 : index
    %153 = vector.load %arg8[%c5_154, %c0_155, %c0_156] : memref<9x128x128xf32, #tpu.memory_space<vmem>>, vector<1x128x128xf32>
    %154 = vector.shape_cast %153 : vector<1x128x128xf32> to vector<128x128xf32>
    %cst_157 = arith.constant dense<0.000000e+00> : vector<64x128xf32>
    %155 = tpu.matmul %152, %154, %cst_157 {dimension_numbers = #tpu.dot_dimension_numbers<[1], [0], [0], [1], [0, 0, 1, 1], [], []>} : vector<64x128xf32>, vector<128x128xf32>, vector<64x128xf32> -> vector<64x128xf32>
    %156 = arith.addf %150, %155 : vector<64x128xf32>
    %c2_158 = arith.constant 2 : index
    %c0_159 = arith.constant 0 : index
    %c0_160 = arith.constant 0 : index
    %157 = vector.load %arg13[%c2_158, %c0_159, %c0_160] : memref<10x10x128xf32, #tpu.memory_space<vmem>>, vector<8x8x128xf32>
    %158 = vector.shape_cast %157 : vector<8x8x128xf32> to vector<64x128xf32>
    %c6_161 = arith.constant 6 : index
    %c0_162 = arith.constant 0 : index
    %c0_163 = arith.constant 0 : index
    %159 = vector.load %arg8[%c6_161, %c0_162, %c0_163] : memref<9x128x128xf32, #tpu.memory_space<vmem>>, vector<1x128x128xf32>
    %160 = vector.shape_cast %159 : vector<1x128x128xf32> to vector<128x128xf32>
    %cst_164 = arith.constant dense<0.000000e+00> : vector<64x128xf32>
    %161 = tpu.matmul %158, %160, %cst_164 {dimension_numbers = #tpu.dot_dimension_numbers<[1], [0], [0], [1], [0, 0, 1, 1], [], []>} : vector<64x128xf32>, vector<128x128xf32>, vector<64x128xf32> -> vector<64x128xf32>
    %162 = arith.addf %156, %161 : vector<64x128xf32>
    %c2_165 = arith.constant 2 : index
    %c1_166 = arith.constant 1 : index
    %c0_167 = arith.constant 0 : index
    %163 = vector.load %arg13[%c2_165, %c1_166, %c0_167] : memref<10x10x128xf32, #tpu.memory_space<vmem>>, vector<8x8x128xf32>
    %164 = vector.shape_cast %163 : vector<8x8x128xf32> to vector<64x128xf32>
    %c7_168 = arith.constant 7 : index
    %c0_169 = arith.constant 0 : index
    %c0_170 = arith.constant 0 : index
    %165 = vector.load %arg8[%c7_168, %c0_169, %c0_170] : memref<9x128x128xf32, #tpu.memory_space<vmem>>, vector<1x128x128xf32>
    %166 = vector.shape_cast %165 : vector<1x128x128xf32> to vector<128x128xf32>
    %cst_171 = arith.constant dense<0.000000e+00> : vector<64x128xf32>
    %167 = tpu.matmul %164, %166, %cst_171 {dimension_numbers = #tpu.dot_dimension_numbers<[1], [0], [0], [1], [0, 0, 1, 1], [], []>} : vector<64x128xf32>, vector<128x128xf32>, vector<64x128xf32> -> vector<64x128xf32>
    %168 = arith.addf %162, %167 : vector<64x128xf32>
    %c2_172 = arith.constant 2 : index
    %c2_173 = arith.constant 2 : index
    %c0_174 = arith.constant 0 : index
    %169 = vector.load %arg13[%c2_172, %c2_173, %c0_174] : memref<10x10x128xf32, #tpu.memory_space<vmem>>, vector<8x8x128xf32>
    %170 = vector.shape_cast %169 : vector<8x8x128xf32> to vector<64x128xf32>
    %c8_175 = arith.constant 8 : index
    %c0_176 = arith.constant 0 : index
    %c0_177 = arith.constant 0 : index
    %171 = vector.load %arg8[%c8_175, %c0_176, %c0_177] : memref<9x128x128xf32, #tpu.memory_space<vmem>>, vector<1x128x128xf32>
    %172 = vector.shape_cast %171 : vector<1x128x128xf32> to vector<128x128xf32>
    %cst_178 = arith.constant dense<0.000000e+00> : vector<64x128xf32>
    %173 = tpu.matmul %170, %172, %cst_178 {dimension_numbers = #tpu.dot_dimension_numbers<[1], [0], [0], [1], [0, 0, 1, 1], [], []>} : vector<64x128xf32>, vector<128x128xf32>, vector<64x128xf32> -> vector<64x128xf32>
    %174 = arith.addf %168, %173 : vector<64x128xf32>
    %c0_179 = arith.constant 0 : index
    %c0_180 = arith.constant 0 : index
    %175 = vector.load %arg9[%c0_179, %c0_180] : memref<1x128xf32, #tpu.memory_space<vmem>>, vector<1x128xf32>
    %176 = vector.broadcast %175 : vector<1x128xf32> to vector<64x128xf32>
    %177 = arith.mulf %174, %176 : vector<64x128xf32>
    %c0_181 = arith.constant 0 : index
    %c0_182 = arith.constant 0 : index
    %178 = vector.load %arg10[%c0_181, %c0_182] : memref<1x128xf32, #tpu.memory_space<vmem>>, vector<1x128xf32>
    %179 = vector.broadcast %178 : vector<1x128xf32> to vector<64x128xf32>
    %180 = arith.addf %177, %179 : vector<64x128xf32>
    %cst_183 = arith.constant 0.000000e+00 : f32
    %181 = vector.broadcast %cst_183 : f32 to vector<64x128xf32>
    %182 = arith.cmpf ogt, %180, %181 : vector<64x128xf32>
    %cst_184 = arith.constant 0.00999999977 : f32
    %183 = vector.broadcast %cst_184 : f32 to vector<64x128xf32>
    %184 = arith.mulf %183, %180 : vector<64x128xf32>
    %185 = arith.select %182, %180, %184 : vector<64x128xi1>, vector<64x128xf32>
    %186 = vector.shape_cast %185 : vector<64x128xf32> to vector<8x8x128xf32>
    %187 = vector.extract_strided_slice %186 {offsets = [0, 0, 0], sizes = [8, 8, 8], strides = [1, 1, 1]} : vector<8x8x128xf32> to vector<8x8x8xf32>
    %c0_185 = arith.constant 0 : index
    %c0_186 = arith.constant 0 : index
    %c0_187 = arith.constant 0 : index
    %c0_188 = arith.constant 0 : index
    %188 = vector.load %arg11[%c0_185, %c0_186, %c0_187, %c0_188] : memref<1x8x8x8xf32, #tpu.memory_space<vmem>>, vector<1x8x8x8xf32>
    %189 = vector.shape_cast %188 : vector<1x8x8x8xf32> to vector<8x8x8xf32>
    %190 = vector.shape_cast %187 : vector<8x8x8xf32> to vector<1x8x8x8xf32>
    tpu.vector_store %arg11[%c0_185, %c0_186, %c0_187, %c0_188], %190 {strides = array<i32>} : memref<1x8x8x8xf32, #tpu.memory_space<vmem>>, vector<1x8x8x8xf32>,
    return
  }
  func.func @transform_0(%arg0: i32, %arg1: i32) -> (i32, i32, i32, i32, i32) {
    %c0_i32 = arith.constant 0 : i32
    %c0_i32_0 = arith.constant 0 : i32
    %c0_i32_1 = arith.constant 0 : i32
    %c0_i32_2 = arith.constant 0 : i32
    return %arg0, %arg1, %c0_i32, %c0_i32_0, %c0_i32_1 : i32, i32, i32, i32, i32
  }
  func.func @transform_1(%arg0: i32, %arg1: i32) -> (i32, i32, i32, i32, i32) {
    %c4_i32 = arith.constant 4 : i32
    %0 = arith.muli %arg1, %c4_i32 : i32
    %c1_i32 = arith.constant 1 : i32
    %1 = arith.subi %0, %c1_i32 : i32
    %c0_i32 = arith.constant 0 : i32
    %2 = arith.maxsi %1, %c0_i32 : i32
    %c0_i32_0 = arith.constant 0 : i32
    %c0_i32_1 = arith.constant 0 : i32
    %c0_i32_2 = arith.constant 0 : i32
    %c0_i32_3 = arith.constant 0 : i32
    return %arg0, %2, %c0_i32_0, %c0_i32_1, %c0_i32_2 : i32, i32, i32, i32, i32
  }
  func.func @transform_2(%arg0: i32, %arg1: i32) -> (i32, i32, i32, i32, i32) {
    %c1_i32 = arith.constant 1 : i32
    %0 = arith.addi %arg1, %c1_i32 : i32
    %c4_i32 = arith.constant 4 : i32
    %1 = arith.muli %0, %c4_i32 : i32
    %c3_i32 = arith.constant 3 : i32
    %2 = arith.minsi %1, %c3_i32 : i32
    %c0_i32 = arith.constant 0 : i32
    %c0_i32_0 = arith.constant 0 : i32
    %c0_i32_1 = arith.constant 0 : i32
    %c0_i32_2 = arith.constant 0 : i32
    return %arg0, %2, %c0_i32, %c0_i32_0, %c0_i32_1 : i32, i32, i32, i32, i32
  }
  func.func @transform_3(%arg0: i32, %arg1: i32) -> (i32, i32, i32) {
    %c0_i32 = arith.constant 0 : i32
    %c0_i32_0 = arith.constant 0 : i32
    %c0_i32_1 = arith.constant 0 : i32
    %c0_i32_2 = arith.constant 0 : i32
    return %c0_i32, %c0_i32_0, %c0_i32_1 : i32, i32, i32
  }
  func.func @transform_4(%arg0: i32, %arg1: i32) -> (i32, i32) {
    %c0_i32 = arith.constant 0 : i32
    %c0_i32_0 = arith.constant 0 : i32
    %c0_i32_1 = arith.constant 0 : i32
    return %c0_i32, %c0_i32_0 : i32, i32
  }
  func.func @transform_5(%arg0: i32, %arg1: i32) -> (i32, i32) {
    %c0_i32 = arith.constant 0 : i32
    %c0_i32_0 = arith.constant 0 : i32
    %c0_i32_1 = arith.constant 0 : i32
    return %c0_i32, %c0_i32_0 : i32, i32
  }
  func.func @transform_6(%arg0: i32, %arg1: i32) -> (i32, i32, i32) {
    %c0_i32 = arith.constant 0 : i32
    %c0_i32_0 = arith.constant 0 : i32
    %c0_i32_1 = arith.constant 0 : i32
    %c0_i32_2 = arith.constant 0 : i32
    return %c0_i32, %c0_i32_0, %c0_i32_1 : i32, i32, i32
  }
  func.func @transform_7(%arg0: i32, %arg1: i32) -> (i32, i32) {
    %c0_i32 = arith.constant 0 : i32
    %c0_i32_0 = arith.constant 0 : i32
    %c0_i32_1 = arith.constant 0 : i32
    return %c0_i32, %c0_i32_0 : i32, i32
  }
  func.func @transform_8(%arg0: i32, %arg1: i32) -> (i32, i32) {
    %c0_i32 = arith.constant 0 : i32
    %c0_i32_0 = arith.constant 0 : i32
    %c0_i32_1 = arith.constant 0 : i32
    return %c0_i32, %c0_i32_0 : i32, i32
  }
  func.func @transform_9(%arg0: i32, %arg1: i32) -> (i32, i32, i32, i32) {
    %c0_i32 = arith.constant 0 : i32
    %c0_i32_0 = arith.constant 0 : i32
    %c0_i32_1 = arith.constant 0 : i32
    return %arg0, %arg1, %c0_i32, %c0_i32_0 : i32, i32, i32, i32
  }
}

</mosaic_0001>

<bundles_post_ra>
// kernel: tpu_custom_call.1
= control target key start
LH: loop header
LB: loop body
LE: loop exit
PB: predicated region body
PF: predicated region fallthrough
CT: control target
= control target key end

     0   :  { %s6461_s0 = inlined_call_operand.hbm [shape: f32[2,8,2,8,8], index: 0, kind: input, shape index: {}]   ;;  %s6462_s1 = inlined_call_operand.hbm [shape: f32[2,8,2,8,8], index: 1, kind: input, shape index: {}]   ;;  %s6463_s2 = inlined_call_operand.hbm [shape: f32[2,8,2,8,8], index: 2, kind: input, shape index: {}]   ;;  %s6464_s3 = inlined_call_operand.hbm [shape: f32[9,4,128], index: 3, kind: input, shape index: {}]   ;;  %s6465_s4 = inlined_call_operand.vmem [shape: f32[1,128], index: 4, kind: input, shape index: {}]   ;;  %s6466_s5 = inlined_call_operand.vmem [shape: f32[1,128], index: 5, kind: input, shape index: {}]   ;;  %s6467_s6 = inlined_call_operand.hbm [shape: f32[9,128,128], index: 6, kind: input, shape index: {}]   ;;  %s6468_s7 = inlined_call_operand.vmem [shape: f32[1,128], index: 7, kind: input, shape index: {}]   ;;  %s6469_s8 = inlined_call_operand.vmem [shape: f32[1,128], index: 8, kind: input, shape index: {}]   ;;  %s6470_s9 = inlined_call_operand.hbm [shape: f32[2,8,8,8], index: 9, kind: output, shape index: {}]  }
   0x1   :  { %6494 = sst [smem:[#allocation27_spill]] %s6462_s1 }
   0x2   :  { %6495 = sst [smem:[#allocation28_spill]] %s6464_s3 }
   0x3   :  { %6496 = sst [smem:[#allocation29_spill]] %s6470_s9 }
   0x4   :  { %14 = vsyncpa [#allocation5], 0 }
   0x5   :  { %16 = vsyncpa [#allocation5 + $0x1], 0 }
   0x6   :  { %17 = vsyncpa [#allocation8], 0 }
   0x7   :  { %19 = vsyncpa [#allocation8 + $0x1], 0 }
   0x8   :  { %20 = vsyncpa [#allocation11], 0 }
   0x9   :  { %21 = vsyncpa [#allocation6], 0 }
   0xa   :  { %23 = vsyncpa [#allocation6 + $0x1], 0  ;;  %s5624_s30 = smov 0   ;;  %s5626_s10 = smov 0  }
   0xb   :  { %s5628_s11 = smov 0   ;;  %s5630_s12 = smov 0  }
   0xc   :  { %s5632_s13 = smov 0   ;;  %s5634_s14 = smov 0  }
   0xd LB: > { %6497 = sst [smem:[#allocation18_spill]] %s5538_s30  ;;  %s5655_s15 = sadd.s32 4294967295, %s5558_s14   ;;  %s5558_s14 = sphi %s5634_s14, %s29_s14   ;;  %s5554_s13 = sphi %s5632_s13, %s6540_s13   ;;  %s5550_s12 = sphi %s5630_s12, %s6539_s12   ;;  %s5546_s11 = sphi %s5628_s11, %s6538_s11   ;;  %s5542_s10 = sphi %s5626_s10, %s6542_s10   ;;  %s5538_s30 = sphi %s5624_s30, %s6541_s30  }
   0xe   : > { %6498 = sst [smem:[#allocation19_spill]] %s5546_s11  ;;  %s3790_s16 = sadd.s32 4294967294, %s5558_s14  }
   0xf   : > { %6499 = sst [smem:[#allocation20_spill]] %s5550_s12  ;;  %p57_p0 = scmp.ne.s32.totalorder %s5546_s11, %s5542_s10 }
  0x10   : > { %6500 = sst [smem:[#allocation21_spill]] %s5554_s13  ;;  %p58_p1 = scmp.eq.s32.totalorder %s5558_s14, 0 }
  0x11   : > { %6501 = sst [smem:[#allocation22_spill]] %s5558_s14  ;;  %p63_p2 = scmp.ne.s32.totalorder %s5542_s10, %s5538_s30 }
  0x12   : > { %p6473_p3 = scmp.eq.s32.totalorder %s5655_s15, 0  ;;  %p5664_p4 = por %p58_p1, %p57_p0 }
  0x13   : > { %p287_p5 = scmp.eq.s32.totalorder %s5655_s15, 1  ;;  %p293_p7 = scmp.eq.s32.totalorder %s3790_s16, 1 }
  0x14   : > { %p5671_p6 = por %p6473_p3, %p63_p2  ;;  %p3791_p9 = scmp.ge.s32.totalorder %s5558_s14, 1 }
  0x15   : > { %p5675_p8 = por %p287_p5, %p57_p0  ;;  %p5680_p10 = por %p293_p7, %p63_p2 }
  0x16   : > { %s6503_s18 = scalar_select %p5671_p6, 1, 0 }
  0x17   : > { %s6504_s19 = scalar_select %p5675_p8, 1, 0 }
  0x18   : > { %s6506_s20 = scalar_select %p5680_p10, 1, 0 }
  0x19   : > { %6505 = sst [smem:[#allocation23_spill]] %s6504_s19  ;;  %p300_p11 = scmp.lt.s32.totalorder %s5558_s14, 3 }
  0x1a   : > { %6507 = sst [smem:[#allocation24_spill]] %s6506_s20  ;;  %s5560_s22 = smov [#allocation10]  }
  0x1b   : > { %p5685_p12 = pnand %p3791_p9, %p300_p11  ;;  %s312_s23 = sshll.u32 %s5560_s22, 4  ;;  %s5689_s23 = int_to_ptr.vmem [resolvable:$true] %s312_s23 }
  0x1c   : > { %s41_s25 = sadd.s32 1, %s5554_s13  ;;  %s6511_s3 = sld [smem:[#allocation28_spill]] }
  0x1d   : > { %s6508_s21 = scalar_select %p5685_p12, 1, 0 }
  0x1e   : > { %p5237_p13 = pneg %p5685_p12  ;;  %p5702_p2 = scmp.ge.s32.totalorder %s41_s25, 2 }
  0x20   : > { %p5696_p1 = pnand %p5237_p13, %p6473_p3 }
  0x22   : > { %s6509_s24 = scalar_select %p5696_p1, 1, 0 }
  0x23   : > { %s5322_s16 = scalar_lea.hbm %s6511_s3, 576  ;;  %p6483_p7 = pneg %p5696_p1 }
  0x24   : > { %p5323_p5 = scmp.ne.s32.totalorder %s6511_s3, %s5322_s16  ;;  %p5329_p13 = scmp.lt.u32.totalorder %s5322_s16, %s6511_s3 }
  0x26   : > { %p5325_p9 = pnand %p6483_p7, %p5323_p5 }
  0x28   : > { %p5326_p11 = pneg %p5325_p9 }
  0x2a   : > { %p5331_p0 = pnand %p5329_p13, %p5326_p11 }
  0x2c   : > { %5334 = shalt.err (!%p5331_p0)
}
  0x2d   : > { %s5335_s28 = scalar_lea.vmem %s5689_s23, 576  ;;  %p5343_p6 = scmp.lt.s32.totalorder %s5689_s23, %s5689_s23 }
  0x2e   : > { %p5336_p3 = scmp.ne.s32.totalorder %s5689_s23, %s5335_s28  ;;  %p5344_p5 = scmp.lt.s32.totalorder %s5335_s28, %s5335_s28 }
  0x30   : > { %p5338_p10 = pnand %p5336_p3, %p6483_p7  ;;  %p5345_p9 = por %p5344_p5, %p5343_p6 }
  0x32   : > { %p5339_p8 = pneg %p5338_p10 }
  0x34   : > { %p5346_p12 = pnand %p5345_p9, %p5339_p8 }
  0x36   : > { %5349 = shalt.err (!%p5346_p12)
}
  0x37   : > { %s5561_s30 = smov 64   ;;  %s5562_s20 = smov 4  }
  0x38   : > { %5240 = dma.hbm_to_vmem [thread:$0]  (!%p5696_p1), %s6511_s3, 576, %s5689_s23, [#allocation11], %s5561_s30, %s5561_s30, %s5562_s20  }
  0x39   : > { %s6544_s25 = smov (%p5702_p2, %s41_s25), 0  ;;  %p5260_p3 = scmp.lt.s32.totalorder %s5558_s14, 2 }
  0x3a   : > { %6512 = sst [smem:[#allocation25_spill]] %s6544_s25  ;;  %s45_s16 = ssub.s32 %s5554_s13, %s6544_s25 }
  0x3b   : > { %p48_p6 = scmp.eq.s32.totalorder %s45_s16, 0  ;;  %s5741_s22 = sand.u32 1, %s5546_s11  }
  0x3c   : > { %s5744_s28 = sshll.u32 %s5554_s13, 11  ;;  %p5748_p8 = pnand %p5260_p3, %p5664_p4 }
  0x3d   : > { %s6514_s26 = sadd.s32 1, %s5546_s11  ;;  %s375_s27 = sand.u32 1, %s5558_s14  }
  0x3e   : > { %s6513_s9 = scalar_select %p5748_p8, 1, 0 }
  0x3f   : > { %s5755_s23 = scalar_select %p48_p6, %s5546_s11, %s6514_s26  }
  0x40   : > { %s3798_s30 = sshll.u32 %s5741_s22, 5  ;;  %s6516_s1 = sld [smem:[#allocation27_spill]] }
  0x41   : > { %6515 = sst [smem:[#allocation26_spill]] %s5755_s23  ;;  %s379_s17 = scalar_lea.vmem [#allocation7], %s3798_s30 }
  0x42   : > { %s393_s3 = sshll.u32 %s379_s17, 4  ;;  %s5767_s25 = scalar_lea.vmem [#allocation9], %s3798_s30  ;;  %s5765_s3 = int_to_ptr.vmem [resolvable:$true] %s393_s3 }
  0x43   : > { %s421_s26 = sshll.u32 %s5767_s25, 4  ;;  %s5770_s13 = scalar_lea.sflag [#allocation8], %s375_s27  ;;  %s5805_s26 = int_to_ptr.vmem [resolvable:$true] %s421_s26 }
  0x44   : > { %p5776_p10 = pneg %p5748_p8 }
  0x46   : > { %s5763_s16 = scalar_lea.hbm %s6516_s1, %s5744_s28  ;;  %s5355_s30 = scalar_lea.hbm %s6516_s1, 4096 }
  0x47   : > { %s5350_s23 = scalar_lea.hbm %s5763_s16, 512  ;;  %p5356_p2 = scmp.lt.u32.totalorder %s5763_s16, %s6516_s1 }
  0x48   : > { %p5351_p4 = scmp.ne.s32.totalorder %s5763_s16, %s5350_s23  ;;  %p5357_p11 = scmp.lt.u32.totalorder %s5355_s30, %s5350_s23 }
  0x49   : > { %s6517_s20 = scalar_select %p5776_p10, 1, 0 }
  0x4a   : > { %p5353_p12 = pnand %p5776_p10, %p5351_p4  ;;  %p5358_p13 = por %p5357_p11, %p5356_p2 }
  0x4b   : > { %p5359_p5 = scmp.lt.u32.totalorder %s5350_s23, %s5763_s16 }
  0x4c   : > { %p5354_p0 = pneg %p5353_p12 }
  0x4d   : > { %p5360_p9 = por %p5359_p5, %p5358_p13 }
  0x4f   : > { %p5361_p3 = pnand %p5360_p9, %p5354_p0 }
  0x51   : > { %5364 = shalt.err (!%p5361_p3)
}
  0x52   : > { %s5365_s27 = scalar_lea.vmem %s5765_s3, 512  ;;  %s5563_s29 = smov [#allocation7]  }
  0x53   : > { %p5366_p6 = scmp.ne.s32.totalorder %s5765_s3, %s5365_s27  ;;  %s5370_s17 = sshll.u32 %s5563_s29, 4  ;;  %s5371_s17 = int_to_ptr.vmem [resolvable:$false] %s5370_s17 }
  0x54   : > { %s5372_s11 = scalar_lea.vmem %s5371_s17, 1024  ;;  %p5373_p7 = scmp.lt.s32.totalorder %s5765_s3, %s5371_s17 }
  0x55   : > { %p5368_p4 = pnand %p5366_p6, %p5776_p10  ;;  %p5374_p1 = scmp.lt.s32.totalorder %s5372_s11, %s5365_s27 }
  0x57   : > { %p5369_p12 = pneg %p5368_p4  ;;  %p5375_p2 = por %p5374_p1, %p5373_p7 }
  0x59   : > { %p5376_p11 = pnand %p5375_p2, %p5369_p12 }
  0x5b   : > { %5379 = shalt.err (!%p5376_p11)
}
  0x5c   : > { %s6492_s14 = smov 128   ;;  %s5565_s23 = smov 8  }
  0x5d   : > { %5250 = dma.hbm_to_vmem [thread:$0]  (!%p5748_p8), %s5763_s16, 512, %s5765_s3, %s5770_s13, %s6492_s14, %s6492_s14, %s5565_s23  }
  0x5e   : > { %s5566_s30 = smov [#allocation12]   ;;  %s3795_s29 = sshll.u32 %s5741_s22, 7 }
  0x5f   : > { %s331_s27 = sshll.u32 %s5566_s30, 4  ;;  %s5380_s1 = scalar_lea.hbm %s6467_s6, 18432  ;;  %s332_s27 = int_to_ptr.vmem [resolvable:$true] %s331_s27 }
  0x60   : > { %p5381_p1 = scmp.ne.s32.totalorder %s6467_s6, %s5380_s1  ;;  %p6518_p7 = scmp.ne.s32.totalorder %s6509_s24, 0 }
  0x61   : > { %p5387_p9 = scmp.lt.u32.totalorder %s5380_s1, %s6467_s6 }
  0x62   : > { %p6519_p0 = pneg %p6518_p7 }
  0x64   : > { %p5383_p13 = pnand %p5381_p1, %p6519_p0 }
  0x66   : > { %p5384_p5 = pneg %p5383_p13 }
  0x68   : > { %p5389_p3 = pnand %p5387_p9, %p5384_p5 }
  0x6a   : > { %5392 = shalt.err (!%p5389_p3)
}
  0x6b   : > { %s5393_s16 = scalar_lea.vmem %s332_s27, 18432  ;;  %p6520_p4 = pmov %p6519_p0 }
  0x6c   : > { %p5394_p6 = scmp.ne.s32.totalorder %s332_s27, %s5393_s16  ;;  %p5401_p11 = scmp.lt.s32.totalorder %s332_s27, %s332_s27 }
  0x6d   : > { %p5402_p8 = scmp.lt.s32.totalorder %s5393_s16, %s5393_s16 }
  0x6e   : > { %p5396_p12 = pnand %p5394_p6, %p6520_p4 }
  0x6f   : > { %p5403_p10 = por %p5402_p8, %p5401_p11 }
  0x70   : > { %p5397_p2 = pneg %p5396_p12 }
  0x72   : > { %p5404_p0 = pnand %p5403_p10, %p5397_p2 }
  0x74   : > { %5407 = shalt.err (!%p5404_p0)
}
  0x75   : > { %5243 = dma.hbm_to_vmem [thread:$0]  (!%p6518_p7), %s6467_s6, 18432, %s332_s27, [#allocation11], %s6492_s14, %s6492_s14, %s5565_s23  }
  0x76   : > { %s5835_s17 = scalar_lea.hbm %s6461_s0, %s5744_s28  ;;  %s355_s24 = scalar_lea.vmem [#allocation4], %s3795_s29 }
  0x77   : > { %s365_s11 = sshll.u32 %s355_s24, 4  ;;  %s3922_s3 = sadd.s32 1536, %s5744_s28  ;;  %s5838_s11 = int_to_ptr.vmem [resolvable:$true] %s365_s11 }
  0x78   : > { %s5843_s1 = scalar_lea.hbm %s6463_s2, %s3922_s3  ;;  %s352_s27 = scalar_lea.sflag [#allocation5], %s5741_s22 }
  0x79   : > { %s5408_s12 = scalar_lea.hbm %s5835_s17, 2048  ;;  %p6521_p10 = scmp.ne.s32.totalorder %s6517_s20, 0 }
  0x7a   : > { %p5409_p8 = scmp.ne.s32.totalorder %s5835_s17, %s5408_s12  ;;  %s5413_s14 = scalar_lea.hbm %s6461_s0, 4096 }
  0x7b   : > { %p5414_p13 = scmp.lt.u32.totalorder %s5835_s17, %s6461_s0  ;;  %p5415_p5 = scmp.lt.u32.totalorder %s5413_s14, %s5408_s12 }
  0x7c   : > { %p5411_p1 = pnand %p5409_p8, %p6521_p10  ;;  %p5417_p3 = scmp.lt.u32.totalorder %s5408_s12, %s5835_s17 }
  0x7d   : > { %p5416_p9 = por %p5415_p5, %p5414_p13 }
  0x7e   : > { %p5412_p7 = pneg %p5411_p1 }
  0x7f   : > { %p5418_p6 = por %p5417_p3, %p5416_p9 }
  0x81   : > { %p5419_p4 = pnand %p5418_p6, %p5412_p7 }
  0x83   : > { %5422 = shalt.err (!%p5419_p4)
}
  0x84   : > { %s5423_s28 = scalar_lea.vmem %s5838_s11, 2048  ;;  %s5567_s3 = smov [#allocation4]  }
  0x85   : > { %p5424_p12 = scmp.ne.s32.totalorder %s5838_s11, %s5423_s28  ;;  %s5428_s25 = sshll.u32 %s5567_s3, 4  ;;  %s5429_s25 = int_to_ptr.vmem [resolvable:$false] %s5428_s25 }
  0x86   : > { %s5430_s16 = scalar_lea.vmem %s5429_s25, 4096  ;;  %p5431_p0 = scmp.lt.s32.totalorder %s5838_s11, %s5429_s25 }
  0x87   : > { %p5426_p2 = pnand %p5424_p12, %p6521_p10  ;;  %p5432_p8 = scmp.lt.s32.totalorder %s5430_s16, %s5423_s28 }
  0x89   : > { %p5427_p11 = pneg %p5426_p2  ;;  %p5433_p1 = por %p5432_p8, %p5431_p0 }
  0x8b   : > { %p5434_p13 = pnand %p5433_p1, %p5427_p11 }
  0x8d   : > { %5437 = shalt.err (!%p5434_p13)
}
  0x8e   : > { %p6522_p7 = scmp.ne.s32.totalorder %s6513_s9, 0  ;;  %s6523_s14 = smov 128  }
  0x8f   : > { %s5438_s12 = scalar_lea.hbm %s5843_s1, 512  ;;  %s5443_s29 = scalar_lea.hbm %s6463_s2, 4096 }
  0x90   : > { %5247 = dma.hbm_to_vmem [thread:$0]  (!%p6522_p7), %s5835_s17, 2048, %s5838_s11, %s352_s27, %s6523_s14, %s6523_s14, %s5565_s23  }
  0x91   : > { %p5439_p5 = scmp.ne.s32.totalorder %s5843_s1, %s5438_s12  ;;  %p5444_p6 = scmp.lt.u32.totalorder %s5843_s1, %s6463_s2 }
  0x92   : > { %p5445_p4 = scmp.lt.u32.totalorder %s5443_s29, %s5438_s12  ;;  %p5447_p2 = scmp.lt.u32.totalorder %s5438_s12, %s5843_s1 }
  0x93   : > { %p5441_p9 = pnand %p5439_p5, %p6521_p10 }
  0x94   : > { %p5446_p12 = por %p5445_p4, %p5444_p6 }
  0x95   : > { %p5442_p3 = pneg %p5441_p9 }
  0x96   : > { %p5448_p11 = por %p5447_p2, %p5446_p12 }
  0x98   : > { %p5449_p0 = pnand %p5448_p11, %p5442_p3 }
  0x9a   : > { %5452 = shalt.err (!%p5449_p0)
}
  0x9b   : > { %s5453_s22 = scalar_lea.vmem %s5805_s26, 512  ;;  %s5568_s17 = smov [#allocation9]  }
  0x9c   : > { %p5454_p8 = scmp.ne.s32.totalorder %s5805_s26, %s5453_s22  ;;  %s5458_s11 = sshll.u32 %s5568_s17, 4  ;;  %s5459_s11 = int_to_ptr.vmem [resolvable:$false] %s5458_s11 }
  0x9d   : > { %s5460_s27 = scalar_lea.vmem %s5459_s11, 1024  ;;  %p5461_p5 = scmp.lt.s32.totalorder %s5805_s26, %s5459_s11 }
  0x9e   : > { %p5456_p1 = pnand %p5454_p8, %p6521_p10  ;;  %p5462_p9 = scmp.lt.s32.totalorder %s5460_s27, %s5453_s22 }
  0xa0   : > { %p5457_p13 = pneg %p5456_p1  ;;  %p5463_p6 = por %p5462_p9, %p5461_p5 }
  0xa2   : > { %p5464_p4 = pnand %p5463_p6, %p5457_p13 }
  0xa4   : > { %5467 = shalt.err (!%p5464_p4)
}
  0xa5   : > { %5253 = dma.hbm_to_vmem [thread:$0]  (!%p6522_p7), %s5843_s1, 512, %s5805_s26, %s5770_s13, %s6523_s14, %s6523_s14, %s5565_s23  }
  0xa6   : > { %p6524_p10 = scmp.ne.s32.totalorder %s6508_s21, 0 }
  0xa7   : > { %s5900_s20 = sand.u32 (!%p6524_p10), 1, %s5542_s10   ;;  %p6525_p3 = scmp.ne.s32.totalorder (!%p6524_p10), %s6503_s18, 0 }
  0xa8   : > { %433 = sbr.rel (%p6524_p10) target bundleno = 1155 (0x483), region = 56  ;;  %s3805_s3 = sshll.u32 (!%p6524_p10), %s5900_s20, 7 }
  0xa9   : > { %s436_s25 = scalar_lea.sflag (!%p6524_p10), [#allocation5], %s5900_s20  ;;  %s5904_s16 = scalar_lea.vmem (!%p6524_p10), [#allocation4], %s3805_s3 }
  0xaf   : > { %5521 = dma.done.wait (%p6525_p3), %s436_s25, 2048  }
  0xb0   : > { %5523 = vsyncadd (%p6525_p3), %s436_s25, 4294965248  ;;  %s444_s9 = sand.u32 1, %s5655_s15  }
  0xb1   : > { %s445_s13 = scalar_lea.sflag [#allocation8], %s444_s9 }
  0xb2   : > { %5525 = dma.done.wait (%p6525_p3), %s445_s13, 1024  }
  0xb3   : > { %5527 = vsyncadd (%p6525_p3), %s445_s13, 4294966272  ;;  %p6526_p7 = scmp.eq.s32.totalorder %s5655_s15, 0 }
  0xb5   : > { %5529 = dma.done.wait (%p6526_p7), [#allocation11], 19008   ;;  %p6527_p12 = pmov %p6526_p7 }
  0xb6   : > { %vm587_vm0 = vcmask 31744   ;;  %v5569_v0 = vmov 0.0   ;;  %v526_v1 = vld [vmem:[%s5904_s16 + $0x20] sm:$0xff]  ;;  %v527_v2 = vld [vmem:[%s5904_s16 + $0x28] sm:$0xff]  ;;  %v528_v6 = vld [vmem:[%s5904_s16 + $0x30] sm:$0xff]  ;;  %s5570_s15 = smov 124  }
  0xb7   : > { %5531 = vsyncadd (%p6527_p12), [#allocation11], 4294948288  ;;  %634 = vst.msk [vmem:[#allocation2 + $0x1] sm:$0xff] %vm587_vm0, %v5569_v0  ;;  %v522_v3 = vld [vmem:[%s5904_s16] sm:$0xff]  ;;  %v540_v4 = vmax.f32 %v526_v1, %v527_v2  ;;  %v523_v5 = vld [vmem:[%s5904_s16 + $0x8] sm:$0xff]  ;;  %vm747_vm1 = vcmask 1043456  }
  0xb8   : > { %635 = vst.msk [vmem:[#allocation2 + $0x11] sm:$0xff] %vm587_vm0, %v5569_v0  ;;  %643 = vst.msk [vmem:[#allocation2 + $0xa1] sm:$0xff] %vm587_vm0, %v5569_v0  ;;  %v529_v7 = vld [vmem:[%s5904_s16 + $0x38] sm:$0xff]  ;;  %v538_v8 = vmax.f32 %v522_v3, %v523_v5  ;;  %v524_v9 = vld [vmem:[%s5904_s16 + $0x10] sm:$0xff]  ;;  %vm657_vm2 = vcmask 24576   ;;  %s3810_s30 = sshll.u32 %s5900_s20, 6 }
  0xb9   : > { %644 = vst.msk [vmem:[#allocation2 + $0xb1] sm:$0xff] %vm587_vm0, %v5569_v0  ;;  %v525_v10 = vld [vmem:[%s5904_s16 + $0x18] sm:$0xff]  ;;  %558 = vrot.lane.b32.xlu1 %v540_v4, %s5570_s15  ;;  %v541_v11 = vmax.f32 %v528_v6, %v529_v7  ;;  %v532_v13 = vld [vmem:[%s5904_s16 + $0x50] sm:$0xff]  ;;  %v530_v15 = vld [vmem:[%s5904_s16 + $0x40] sm:$0xff]  ;;  %vm3609_vm14 = vcmask 64512   ;;  %s6387_s29 = scalar_lea.vmem [#allocation13], %s3810_s30 }
  0xba   : > { %554 = vrot.lane.b32.xlu0 %v538_v8, %s5570_s15  ;;  %v539_v12 = vmax.f32 %v524_v9, %v525_v10  ;;  %v533_v14 = vld [vmem:[%s5904_s16 + $0x58] sm:$0xff]  ;;  %v531_v16 = vld [vmem:[%s5904_s16 + $0x48] sm:$0xff]  ;;  %v716_v17 = vld [vmem:[#allocation10 + $0x4] sm:$0xf]  ;;  %s6528_s24 = sld [smem:[#allocation20_spill]]  ;;  %s3634_s22 = sshll.u32 %s6387_s29, 4  ;;  %s6408_s22 = int_to_ptr.vmem [resolvable:$true] %s3634_s22 }
  0xbb   : > { %4240 = vmatprep.subr.msk.mxu0 %vm747_vm1, %v716_v17  ;;  %v543_v20 = vmax.f32 %v532_v13, %v533_v14  ;;  %v542_v21 = vmax.f32 %v530_v15, %v531_v16  ;;  %v536_v22 = vld [vmem:[%s5904_s16 + $0x70] sm:$0xff]  ;;  %v537_v23 = vld [vmem:[%s5904_s16 + $0x78] sm:$0xff]  ;;  %v704_v24 = vld [vmem:[#allocation10] sm:$0xf]  ;;  %s6529_s17 = sld [smem:[#allocation23_spill]]  ;;  %s5468_s9 = scalar_lea.vmem %s6408_s22, 1024 }
  0xbc   : > { %4241 = vmatpush3.msk.msra.mxu0 %vm747_vm1, %v716_v17  ;;  %v534_v25 = vld [vmem:[%s5904_s16 + $0x60] sm:$0xff]  ;;  %v535_v26 = vld [vmem:[%s5904_s16 + $0x68] sm:$0xff]  ;;  %v545_v27 = vmax.f32 %v536_v22, %v537_v23  ;;  %s6530_s3 = sld [smem:[#allocation29_spill]]  ;;  %s3619_s16 = scalar_lea.sflag [#allocation6], %s5900_s20 }
  0xbd   : > { %560 = vrot.lane.b32.xlu1 %v541_v11, %s5570_s15  ;;  %4257 = vmatprep.subr.msk.mxu0 %vm747_vm1, %v704_v24  ;;  %v544_v29 = vmax.f32 %v534_v25, %v535_v26  ;;  %v5962_v31 = vld [vmem:[#allocation10 + $0x8] sm:$0xf]  ;;  %v1196_v16 = vld [vmem:[#allocation10 + $0xc] sm:$0xf]  ;;  %p5469_p2 = scmp.ne.s32.totalorder %s6408_s22, %s5468_s9  ;;  %s5571_s13 = smov [#allocation13]  }
  0xbe   : > { %v705_v18 = vld [vmem:[#allocation2 + $0x1] sm:$0xff]  ;;  %556 = vrot.lane.b32.xlu0 %v539_v12, %s5570_s15 }
  0xbf   : > { %4242 = vmatprep.mubr.msk.f32.mxu0 %vm587_vm0, %v705_v18  ;;  %v5943_v19 = vld [vmem:[#allocation2 + $0x11] sm:$0xff]  ;;  %v645_v28 = vld [vmem:[#allocation2 + $0x8] sm:$0x1]  ;;  %v670_v32 = vld [vmem:[#allocation2 + $0x1] sm:$0x1] }
  0xc0   : > { %4243 = vmatmul.mubr.msk.f32.vlgmr.msra.gmra.mrb[0].mxu0 %vm587_vm0, %v5943_v19  ;;  %658 = vst.msk [vmem:[#allocation2] sm:$0x1] %vm657_vm2, %v645_v28  ;;  %v646_v30 = vld [vmem:[#allocation2 + $0x18] sm:$0x1]  ;;  %682 = vst.msk [vmem:[#allocation2 + $0x9] sm:$0x1] %vm657_vm2, %v670_v32 }
  0xc1   : > { %4258 = vmatpush3.msk.msra.mxu0 %vm747_vm1, %v704_v24  ;;  %564 = vrot.lane.b32.xlu1 %v543_v20, %s5570_s15  ;;  %659 = vst.msk [vmem:[#allocation2 + $0x10] sm:$0x1] %vm657_vm2, %v646_v30  ;;  %v671_v33 = vld [vmem:[#allocation2 + $0x11] sm:$0x1]  ;;  %v655_v34 = vld [vmem:[#allocation2 + $0xa8] sm:$0x1] }
  0xc2   : > { %562 = vrot.lane.b32.xlu0 %v542_v21, %s5570_s15  ;;  %4274 = vmatprep.subr.msk.mxu0 %vm747_vm1, %v5962_v31  ;;  %683 = vst.msk [vmem:[#allocation2 + $0x19] sm:$0x1] %vm657_vm2, %v671_v33  ;;  %668 = vst.msk [vmem:[#allocation2 + $0xa0] sm:$0x1] %vm657_vm2, %v655_v34  ;;  %v680_v35 = vld [vmem:[#allocation2 + $0xa1] sm:$0x1] }
  0xc3   : > { %692 = vst.msk [vmem:[#allocation2 + $0xa9] sm:$0x1] %vm657_vm2, %v680_v35  ;;  %v656_v56 = vld [vmem:[#allocation2 + $0xb8] sm:$0x1]  ;;  %v1366_v28 = vld [vmem:[#allocation10 + $0x10] sm:$0xf] }
  0xc4   : > { %669 = vst.msk [vmem:[#allocation2 + $0xb0] sm:$0x1] %vm657_vm2, %v656_v56  ;;  %v681_v30 = vld [vmem:[#allocation2 + $0xb1] sm:$0x1]  ;;  %v2596_v35 = vld [vmem:[#allocation12 + $0x100] sm:$0xff]  ;;  %v2364_v56 = vld [vmem:[#allocation12 + $0x98] sm:$0xff] }
  0xc5   : > { %568 = vrot.lane.b32.xlu1 %v545_v27, %s5570_s15  ;;  %693 = vst.msk [vmem:[#allocation2 + $0xb9] sm:$0x1] %vm657_vm2, %v681_v30  ;;  %s3923_s28 = sshll.u32 %s6528_s24, 10  ;;  %p6531_p11 = scmp.ne.s32.totalorder %s6529_s17, 0 }
  0xc6   : > { %566 = vrot.lane.b32.xlu0 %v544_v29, %s5570_s15  ;;  %s6406_s25 = scalar_lea.hbm %s6530_s3, %s3923_s28  ;;  %s5472_s15 = sshll.u32 %s5571_s13, 4  ;;  %s5473_s15 = int_to_ptr.vmem [resolvable:$false] %s5472_s15 }
  0xc7   : > { %v694_v14 = vld [vmem:[#allocation2] sm:$0xff]  ;;  %p5470_p0 = pnand %p5469_p2, %p6531_p11  ;;  %s5474_s18 = scalar_lea.vmem %s5473_s15, 2048 }
  0xc8   : > { %v695_v15 = vld [vmem:[#allocation2 + $0x10] sm:$0xff]  ;;  %v1014_v25 = vld [vmem:[#allocation2 + $0x2] sm:$0xff]  ;;  %p5475_p1 = scmp.lt.s32.totalorder %s6408_s22, %s5473_s15  ;;  %p5476_p13 = scmp.lt.s32.totalorder %s5474_s18, %s5468_s9 }
  0xc9   : > { %p5471_p8 = pneg %p5470_p0 }
  0xca   : > { %p5477_p5 = por %p5476_p13, %p5475_p1 }
  0xcc   : > { %p5478_p9 = pnand %p5477_p5, %p5471_p8 }
 0x12b   : > { %v559_v36 = vpop.permute.xlu1 %558 }
 0x12c   : > { %v580_v37 = vmax.f32 %v540_v4, %v559_v36  ;;  %v555_v38 = vpop.permute.xlu0 %554  ;;  %v2597_v36 = vld [vmem:[#allocation12 + $0x108] sm:$0xff] }
 0x12d   : > { %v578_v39 = vmax.f32 %v538_v8, %v555_v38  ;;  %v4853_v38 = vpack.c.bf16 %v2597_v36, %v2596_v35  ;;  %v2735_v36 = vld [vmem:[#allocation12 + $0x180] sm:$0xff] }
 0x12e   : > { %590 = vst.msk [vmem:[#allocation2 + $0x41] sm:$0xff] %vm587_vm0, %v580_v37 }
 0x12f   : > { %588 = vst.msk [vmem:[#allocation2 + $0x21] sm:$0xff] %vm587_vm0, %v578_v39  ;;  %v561_v40 = vpop.permute.xlu1 %560  ;;  %v2598_v39 = vld [vmem:[#allocation12 + $0x110] sm:$0xff]  ;;  %4854 = vmatprep.subr.bf16.mxu1 %v4853_v38 }
 0x130   : > { %v581_v41 = vmax.f32 %v541_v11, %v561_v40  ;;  %v557_v42 = vpop.permute.xlu0 %556  ;;  %4856 = vmatpush3.bf16.msra.mxu1 %v4853_v38 }
 0x131   : > { %v579_v43 = vmax.f32 %v539_v12, %v557_v42 }
 0x132   : > { %591 = vst.msk [vmem:[#allocation2 + $0x51] sm:$0xff] %vm587_vm0, %v581_v41  ;;  %v2599_v41 = vld [vmem:[#allocation12 + $0x118] sm:$0xff] }
 0x133   : > { %589 = vst.msk [vmem:[#allocation2 + $0x31] sm:$0xff] %vm587_vm0, %v579_v43  ;;  %v565_v44 = vpop.permute.xlu1 %564  ;;  %v4857_v42 = vpack.c.bf16 %v2599_v41, %v2598_v39  ;;  %v6228_v39 = vld [vmem:[%s6465_s4] ss:$0 sm:$0xff] }
 0x134   : > { %v583_v45 = vmax.f32 %v543_v20, %v565_v44  ;;  %v563_v46 = vpop.permute.xlu0 %562  ;;  %v1536_v44 = vld [vmem:[#allocation10 + $0x14] sm:$0xf]  ;;  %v6233_v41 = vld [vmem:[%s6466_s5] ss:$0 sm:$0xff] }
 0x135   : > { %v649_v47 = vld [vmem:[#allocation2 + $0x48] sm:$0x1]  ;;  %v674_v48 = vld [vmem:[#allocation2 + $0x41] sm:$0x1]  ;;  %v582_v49 = vmax.f32 %v542_v21, %v563_v46  ;;  %4858 = vmatprep.subr.bf16.mxu1 %v4857_v42  ;;  %v1706_v46 = vld [vmem:[#allocation10 + $0x18] sm:$0xf] }
 0x136   : > { %v647_v50 = vld [vmem:[#allocation2 + $0x28] sm:$0x1]  ;;  %v672_v51 = vld [vmem:[#allocation2 + $0x21] sm:$0x1]  ;;  %593 = vst.msk [vmem:[#allocation2 + $0x71] sm:$0xff] %vm587_vm0, %v583_v45  ;;  %4860 = vmatpush3.bf16.msra.mxu1 %v4857_v42 }
 0x137   : > { %v5975_v52 = vld [vmem:[#allocation2 + $0x21] sm:$0xff]  ;;  %662 = vst.msk [vmem:[#allocation2 + $0x40] sm:$0x1] %vm657_vm2, %v649_v47  ;;  %686 = vst.msk [vmem:[#allocation2 + $0x49] sm:$0x1] %vm657_vm2, %v674_v48  ;;  %v569_v53 = vpop.permute.xlu1 %568 }
 0x138   : > { %592 = vst.msk [vmem:[#allocation2 + $0x61] sm:$0xff] %vm587_vm0, %v582_v49  ;;  %4245 = vmatprep.mubr.msk.f32.mxu0 %vm587_vm0, %v5975_v52  ;;  %v585_v54 = vmax.f32 %v545_v27, %v569_v53  ;;  %v567_v55 = vpop.permute.xlu0 %566  ;;  %v5984_v60 = vld [vmem:[#allocation2 + $0x41] sm:$0xff]  ;;  %v1015_v27 = vld [vmem:[#allocation2 + $0x12] sm:$0xff]  ;;  %v1876_v47 = vld [vmem:[#allocation10 + $0x1c] sm:$0xf] }
 0x139   : > { %660 = vst.msk [vmem:[#allocation2 + $0x20] sm:$0x1] %vm657_vm2, %v647_v50  ;;  %684 = vst.msk [vmem:[#allocation2 + $0x29] sm:$0x1] %vm657_vm2, %v672_v51  ;;  %v650_v57 = vld [vmem:[#allocation2 + $0x58] sm:$0x1]  ;;  %v584_v59 = vmax.f32 %v544_v29, %v567_v55 }
 0x13a   : > { %v675_v58 = vld [vmem:[#allocation2 + $0x51] sm:$0x1]  ;;  %v648_v61 = vld [vmem:[#allocation2 + $0x38] sm:$0x1]  ;;  %595 = vst.msk [vmem:[#allocation2 + $0x91] sm:$0xff] %vm587_vm0, %v585_v54  ;;  %v1194_v45 = vld [vmem:[#allocation2 + $0xa0] sm:$0xff] }
 0x13b   : > { %v673_v62 = vld [vmem:[#allocation2 + $0x31] sm:$0x1]  ;;  %663 = vst.msk [vmem:[#allocation2 + $0x50] sm:$0x1] %vm657_vm2, %v650_v57  ;;  %687 = vst.msk [vmem:[#allocation2 + $0x59] sm:$0x1] %vm657_vm2, %v675_v58 }
 0x13c   : > { %v5988_v63 = vld [vmem:[#allocation2 + $0x31] sm:$0xff]  ;;  %594 = vst.msk [vmem:[#allocation2 + $0x81] sm:$0xff] %vm587_vm0, %v584_v59  ;;  %v1534_v48 = vld [vmem:[#allocation2 + $0xa2] sm:$0xff] }
 0x13d   : > { %4246 = vmatmul.mubr.msk.f32.gmra.mrb[2].mxu0 %vm587_vm0, %v5988_v63  ;;  %661 = vst.msk [vmem:[#allocation2 + $0x30] sm:$0x1] %vm657_vm2, %v648_v61  ;;  %685 = vst.msk [vmem:[#allocation2 + $0x39] sm:$0x1] %vm657_vm2, %v673_v62  ;;  %v5999_v1 = vld [vmem:[#allocation2 + $0x51] sm:$0xff]  ;;  %v2361_v51 = vld [vmem:[#allocation12 + $0x80] sm:$0xff] }
 0x13e   : > { %4248 = vmatprep.mubr.msk.f32.mxu0 %vm587_vm0, %v5984_v60  ;;  %v652_v2 = vld [vmem:[#allocation2 + $0x78] sm:$0x1]  ;;  %v677_v3 = vld [vmem:[#allocation2 + $0x71] sm:$0x1]  ;;  %v6040_v20 = vld [vmem:[#allocation2 + $0x40] sm:$0xff] }
 0x13f   : > { %v651_v4 = vld [vmem:[#allocation2 + $0x68] sm:$0x1]  ;;  %v676_v5 = vld [vmem:[#allocation2 + $0x61] sm:$0x1]  ;;  %665 = vst.msk [vmem:[#allocation2 + $0x70] sm:$0x1] %vm657_vm2, %v652_v2 }
 0x140   : > { %v6001_v6 = vld [vmem:[#allocation2 + $0x61] sm:$0xff]  ;;  %689 = vst.msk [vmem:[#allocation2 + $0x79] sm:$0x1] %vm657_vm2, %v677_v3  ;;  %664 = vst.msk [vmem:[#allocation2 + $0x60] sm:$0x1] %vm657_vm2, %v651_v4  ;;  %v6011_v7 = vld [vmem:[#allocation2 + $0x71] sm:$0xff] }
 0x141   : > { %4249 = vmatmul.mubr.msk.f32.gmra.mrb[4].mxu0 %vm587_vm0, %v5999_v1  ;;  %688 = vst.msk [vmem:[#allocation2 + $0x69] sm:$0x1] %vm657_vm2, %v676_v5  ;;  %v654_v8 = vld [vmem:[#allocation2 + $0x98] sm:$0x1]  ;;  %v679_v9 = vld [vmem:[#allocation2 + $0x91] sm:$0x1] }
 0x142   : > { %4251 = vmatprep.mubr.msk.f32.mxu0 %vm587_vm0, %v6001_v6  ;;  %667 = vst.msk [vmem:[#allocation2 + $0x90] sm:$0x1] %vm657_vm2, %v654_v8  ;;  %691 = vst.msk [vmem:[#allocation2 + $0x99] sm:$0x1] %vm657_vm2, %v679_v9  ;;  %v6023_v13 = vld [vmem:[#allocation2 + $0x91] sm:$0xff]  ;;  %v6029_v17 = vld [vmem:[#allocation2 + $0x20] sm:$0xff] }
 0x143   : > { %v653_v10 = vld [vmem:[#allocation2 + $0x88] sm:$0x1]  ;;  %v678_v11 = vld [vmem:[#allocation2 + $0x81] sm:$0x1]  ;;  %v6044_v21 = vld [vmem:[#allocation2 + $0x50] sm:$0xff] }
 0x144   : > { %v6013_v12 = vld [vmem:[#allocation2 + $0x81] sm:$0xff]  ;;  %666 = vst.msk [vmem:[#allocation2 + $0x80] sm:$0x1] %vm657_vm2, %v653_v10  ;;  %690 = vst.msk [vmem:[#allocation2 + $0x89] sm:$0x1] %vm657_vm2, %v678_v11  ;;  %v6036_v18 = vld [vmem:[#allocation2 + $0x30] sm:$0xff] }
 0x145   : > { %4252 = vmatmul.mubr.msk.f32.gmra.mrb[6].mxu0 %vm587_vm0, %v6011_v7  ;;  %v6066_v29 = vld [vmem:[#allocation2 + $0x22] sm:$0xff]  ;;  %v6081_v33 = vld [vmem:[#allocation2 + $0x52] sm:$0xff] }
 0x146   : > { %4254 = vmatprep.mubr.msk.f32.mxu0 %vm587_vm0, %v6013_v12  ;;  %v6052_v23 = vld [vmem:[#allocation2 + $0x70] sm:$0xff]  ;;  %v6077_v32 = vld [vmem:[#allocation2 + $0x42] sm:$0xff] }
 0x147   : > { %v6048_v22 = vld [vmem:[#allocation2 + $0x60] sm:$0xff]  ;;  %v6089_v37 = vld [vmem:[#allocation2 + $0x72] sm:$0xff] }
 0x148   : > { %v6085_v34 = vld [vmem:[#allocation2 + $0x62] sm:$0xff]  ;;  %v1704_v50 = vld [vmem:[#allocation2 + $0xb0] sm:$0xff] }
 0x149   : > { %4255 = vmatmul.mubr.msk.f32.gmra.mrb[8].mxu0 %vm587_vm0, %v6023_v13  ;;  %v6060_v26 = vld [vmem:[#allocation2 + $0x90] sm:$0xff]  ;;  %v2046_v49 = vld [vmem:[#allocation10 + $0x20] sm:$0xf]  ;;  %v2365_v58 = vld [vmem:[#allocation12 + $0xa0] sm:$0xff] }
 0x14a   : > { %4259 = vmatprep.mubr.msk.f32.mxu0 %vm587_vm0, %v694_v14  ;;  %v6097_v43 = vld [vmem:[#allocation2 + $0x92] sm:$0xff]  ;;  %v2368_v62 = vld [vmem:[#allocation12 + $0xb8] sm:$0xff]  ;;  %v2369_v2 = vld [vmem:[#allocation12 + $0xc0] sm:$0xff] }
 0x14b   : > { %v6056_v24 = vld [vmem:[#allocation2 + $0x80] sm:$0xff]  ;;  %v2362_v53 = vld [vmem:[#allocation12 + $0x88] sm:$0xff]  ;;  %v2363_v55 = vld [vmem:[#allocation12 + $0x90] sm:$0xff] }
 0x14c   : > { %v6093_v40 = vld [vmem:[#allocation2 + $0x82] sm:$0xff]  ;;  %v4789_v54 = vpack.c.bf16 %v2362_v53, %v2361_v51  ;;  %v4793_v57 = vpack.c.bf16 %v2364_v56, %v2363_v55  ;;  %v2366_v59 = vld [vmem:[#allocation12 + $0xa8] sm:$0xff]  ;;  %v2367_v61 = vld [vmem:[#allocation12 + $0xb0] sm:$0xff] }
 0x14d   : > { %4260 = vmatmul.mubr.msk.f32.vlgmr.msra.gmra.mrb[0].mxu0 %vm587_vm0, %v695_v15  ;;  %v2370_v3 = vld [vmem:[#allocation12 + $0xc8] sm:$0xff]  ;;  %v2600_v5 = vld [vmem:[#allocation12 + $0x120] sm:$0xff]  ;;  %v2371_v8 = vld [vmem:[#allocation12 + $0xd0] sm:$0xff] }
 0x14e   : > { %4275 = vmatpush3.msk.msra.mxu0 %vm747_vm1, %v5962_v31  ;;  %4262 = vmatprep.mubr.msk.f32.mxu0 %vm587_vm0, %v6029_v17  ;;  %v6073_v31 = vld [vmem:[#allocation2 + $0x32] sm:$0xff]  ;;  %v4805_v4 = vpack.c.bf16 %v2370_v3, %v2369_v2  ;;  %v2372_v9 = vld [vmem:[#allocation12 + $0xd8] sm:$0xff]  ;;  %v2373_v14 = vld [vmem:[#allocation12 + $0xe0] sm:$0xff] }
 0x14f   : > { %4291 = vmatprep.subr.msk.mxu0 %vm747_vm1, %v1196_v16  ;;  %v2602_v10 = vld [vmem:[#allocation12 + $0x130] sm:$0xff]  ;;  %v4809_v11 = vpack.c.bf16 %v2372_v9, %v2371_v8 }
 0x150   : > { %v2338_v9 = vld [vmem:[#allocation12 + $0x10] sm:$0xff] }
 0x151   : > { %4263 = vmatmul.mubr.msk.f32.gmra.mrb[2].mxu0 %vm587_vm0, %v6036_v18 }
 0x152   : > { %4265 = vmatprep.mubr.msk.f32.mxu0 %vm587_vm0, %v6040_v20 }
 0x155   : > { %4266 = vmatmul.mubr.msk.f32.gmra.mrb[4].mxu0 %vm587_vm0, %v6044_v21 }
 0x156   : > { %4268 = vmatprep.mubr.msk.f32.mxu0 %vm587_vm0, %v6048_v22 }
 0x159   : > { %4269 = vmatmul.mubr.msk.f32.gmra.mrb[6].mxu0 %vm587_vm0, %v6052_v23 }
 0x15a   : > { %4271 = vmatprep.mubr.msk.f32.mxu0 %vm587_vm0, %v6056_v24 }
 0x15d   : > { %4272 = vmatmul.mubr.msk.f32.gmra.mrb[8].mxu0 %vm587_vm0, %v6060_v26 }
 0x15e   : > { %4276 = vmatprep.mubr.msk.f32.mxu0 %vm587_vm0, %v1014_v25  ;;  %v2607_v25 = vld [vmem:[#allocation12 + $0x158] sm:$0xff] }
 0x161   : > { %4277 = vmatmul.mubr.msk.f32.vlgmr.msra.gmra.mrb[0].mxu0 %vm587_vm0, %v1015_v27 }
 0x162   : > { %4292 = vmatpush3.msk.msra.mxu0 %vm747_vm1, %v1196_v16  ;;  %4279 = vmatprep.mubr.msk.f32.mxu0 %vm587_vm0, %v6066_v29  ;;  %v2604_v16 = vld [vmem:[#allocation12 + $0x140] sm:$0xff] }
 0x163   : > { %4308 = vmatprep.subr.msk.mxu0 %vm747_vm1, %v1366_v28 }
 0x165   : > { %4280 = vmatmul.mubr.msk.f32.gmra.mrb[2].mxu0 %vm587_vm0, %v6073_v31 }
 0x166   : > { %4282 = vmatprep.mubr.msk.f32.mxu0 %vm587_vm0, %v6077_v32 }
 0x169   : > { %4283 = vmatmul.mubr.msk.f32.gmra.mrb[4].mxu0 %vm587_vm0, %v6081_v33 }
 0x16a   : > { %4285 = vmatprep.mubr.msk.f32.mxu0 %vm587_vm0, %v6085_v34 }
 0x16d   : > { %4286 = vmatmul.mubr.msk.f32.gmra.mrb[6].mxu0 %vm587_vm0, %v6089_v37 }
 0x16e   : > { %4288 = vmatprep.mubr.msk.f32.mxu0 %vm587_vm0, %v6093_v40 }
 0x171   : > { %4289 = vmatmul.mubr.msk.f32.gmra.mrb[8].mxu0 %vm587_vm0, %v6097_v43 }
 0x172   : > { %4293 = vmatprep.mubr.msk.f32.mxu0 %vm587_vm0, %v695_v15  ;;  %v2374_v15 = vld [vmem:[#allocation12 + $0xe8] sm:$0xff] }
 0x175   : > { %4294 = vmatmul.mubr.msk.f32.vlgmr.msra.gmra.mrb[0].mxu0 %vm587_vm0, %v6029_v17 }
 0x176   : > { %4309 = vmatpush3.msk.msra.mxu0 %vm747_vm1, %v1366_v28  ;;  %4296 = vmatprep.mubr.msk.f32.mxu0 %vm587_vm0, %v6036_v18  ;;  %v2337_v28 = vld [vmem:[#allocation12 + $0x8] sm:$0xff] }
 0x177   : > { %4325 = vmatprep.subr.msk.mxu0 %vm747_vm1, %v1536_v44 }
 0x179   : > { %4297 = vmatmul.mubr.msk.f32.gmra.mrb[2].mxu0 %vm587_vm0, %v6040_v20 }
 0x17a   : > { %4299 = vmatprep.mubr.msk.f32.mxu0 %vm587_vm0, %v6044_v21 }
 0x17d   : > { %4300 = vmatmul.mubr.msk.f32.gmra.mrb[4].mxu0 %vm587_vm0, %v6048_v22 }
 0x17e   : > { %4302 = vmatprep.mubr.msk.f32.mxu0 %vm587_vm0, %v6052_v23 }
 0x181   : > { %4303 = vmatmul.mubr.msk.f32.gmra.mrb[6].mxu0 %vm587_vm0, %v6056_v24 }
 0x182   : > { %4305 = vmatprep.mubr.msk.f32.mxu0 %vm587_vm0, %v6060_v26 }
 0x185   : > { %4306 = vmatmul.mubr.msk.f32.gmra.mrb[8].mxu0 %vm587_vm0, %v1194_v45 }
 0x186   : > { %4310 = vmatprep.mubr.msk.f32.mxu0 %vm587_vm0, %v5943_v19  ;;  %v1364_v19 = vld [vmem:[#allocation2 + $0xa1] sm:$0xff] }
 0x189   : > { %4311 = vmatmul.mubr.msk.f32.vlgmr.msra.gmra.mrb[0].mxu0 %vm587_vm0, %v5975_v52 }
 0x18a   : > { %4326 = vmatpush3.msk.msra.mxu0 %vm747_vm1, %v1536_v44  ;;  %4313 = vmatprep.mubr.msk.f32.mxu0 %vm587_vm0, %v5988_v63 }
 0x18b   : > { %4342 = vmatprep.subr.msk.mxu0 %vm747_vm1, %v1706_v46 }
 0x18d   : > { %4314 = vmatmul.mubr.msk.f32.gmra.mrb[2].mxu0 %vm587_vm0, %v5984_v60 }
 0x18e   : > { %4316 = vmatprep.mubr.msk.f32.mxu0 %vm587_vm0, %v5999_v1 }
 0x191   : > { %4317 = vmatmul.mubr.msk.f32.gmra.mrb[4].mxu0 %vm587_vm0, %v6001_v6 }
 0x192   : > { %4319 = vmatprep.mubr.msk.f32.mxu0 %vm587_vm0, %v6011_v7 }
 0x195   : > { %4320 = vmatmul.mubr.msk.f32.gmra.mrb[6].mxu0 %vm587_vm0, %v6013_v12 }
 0x196   : > { %4322 = vmatprep.mubr.msk.f32.mxu0 %vm587_vm0, %v6023_v13 }
 0x199   : > { %4323 = vmatmul.mubr.msk.f32.gmra.mrb[8].mxu0 %vm587_vm0, %v1364_v19 }
 0x19a   : > { %4327 = vmatprep.mubr.msk.f32.mxu0 %vm587_vm0, %v1015_v27  ;;  %v2336_v27 = vld [vmem:[#allocation12] sm:$0xff] }
 0x19b   : > { %v6219_v30 = vpack.c.bf16 %v2337_v28, %v2336_v27 }
 0x19d   : > { %4328 = vmatmul.mubr.msk.f32.vlgmr.msra.gmra.mrb[0].mxu0 %vm587_vm0, %v6066_v29 }
 0x19e   : > { %4343 = vmatpush3.msk.msra.mxu0 %vm747_vm1, %v1706_v46  ;;  %4330 = vmatprep.mubr.msk.f32.mxu0 %vm587_vm0, %v6073_v31 }
 0x19f   : > { %4359 = vmatprep.subr.msk.mxu0 %vm747_vm1, %v1876_v47 }
 0x1a1   : > { %4331 = vmatmul.mubr.msk.f32.gmra.mrb[2].mxu0 %vm587_vm0, %v6077_v32 }
 0x1a2   : > { %4333 = vmatprep.mubr.msk.f32.mxu0 %vm587_vm0, %v6081_v33 }
 0x1a5   : > { %4334 = vmatmul.mubr.msk.f32.gmra.mrb[4].mxu0 %vm587_vm0, %v6085_v34 }
 0x1a6   : > { %4336 = vmatprep.mubr.msk.f32.mxu0 %vm587_vm0, %v6089_v37 }
 0x1a9   : > { %4337 = vmatmul.mubr.msk.f32.gmra.mrb[6].mxu0 %vm587_vm0, %v6093_v40 }
 0x1aa   : > { %4339 = vmatprep.mubr.msk.f32.mxu0 %vm587_vm0, %v6097_v43 }
 0x1ad   : > { %4340 = vmatmul.mubr.msk.f32.gmra.mrb[8].mxu0 %vm587_vm0, %v1534_v48 }
 0x1ae   : > { %4344 = vmatprep.mubr.msk.f32.mxu0 %vm587_vm0, %v6029_v17  ;;  %v4813_v17 = vpack.c.bf16 %v2374_v15, %v2373_v14 }
 0x1b1   : > { %4345 = vmatmul.mubr.msk.f32.vlgmr.msra.gmra.mrb[0].mxu0 %vm587_vm0, %v6036_v18  ;;  %v2605_v18 = vld [vmem:[#allocation12 + $0x148] sm:$0xff] }
 0x1b2   : > { %4360 = vmatpush3.msk.msra.mxu0 %vm747_vm1, %v1876_v47  ;;  %4347 = vmatprep.mubr.msk.f32.mxu0 %vm587_vm0, %v6040_v20  ;;  %v4869_v20 = vpack.c.bf16 %v2605_v18, %v2604_v16 }
 0x1b3   : > { %4376 = vmatprep.subr.msk.mxu0 %vm747_vm1, %v2046_v49 }
 0x1b5   : > { %4348 = vmatmul.mubr.msk.f32.gmra.mrb[2].mxu0 %vm587_vm0, %v6044_v21  ;;  %v2375_v21 = vld [vmem:[#allocation12 + $0xf0] sm:$0xff] }
 0x1b6   : > { %4350 = vmatprep.mubr.msk.f32.mxu0 %vm587_vm0, %v6048_v22  ;;  %v2376_v22 = vld [vmem:[#allocation12 + $0xf8] sm:$0xff] }
 0x1b9   : > { %4351 = vmatmul.mubr.msk.f32.gmra.mrb[4].mxu0 %vm587_vm0, %v6052_v23  ;;  %v2606_v23 = vld [vmem:[#allocation12 + $0x150] sm:$0xff] }
 0x1ba   : > { %4353 = vmatprep.mubr.msk.f32.mxu0 %vm587_vm0, %v6056_v24  ;;  %v4817_v24 = vpack.c.bf16 %v2376_v22, %v2375_v21 }
 0x1bd   : > { %4354 = vmatmul.mubr.msk.f32.gmra.mrb[6].mxu0 %vm587_vm0, %v6060_v26  ;;  %v4873_v26 = vpack.c.bf16 %v2607_v25, %v2606_v23 }
 0x1be   : > { %4356 = vmatprep.mubr.msk.f32.mxu0 %vm587_vm0, %v1194_v45 }
 0x1c1   : > { %4357 = vmatmul.mubr.msk.f32.gmra.mrb[8].mxu0 %vm587_vm0, %v1704_v50 }
 0x1c2   : > { %4361 = vmatprep.mubr.msk.f32.mxu0 %vm587_vm0, %v5975_v52  ;;  %v1874_v52 = vld [vmem:[#allocation2 + $0xb1] sm:$0xff] }
 0x1c5   : > { %4362 = vmatmul.mubr.msk.f32.vlgmr.msra.gmra.mrb[0].mxu0 %vm587_vm0, %v5988_v63  ;;  %v4801_v63 = vpack.c.bf16 %v2368_v62, %v2367_v61 }
 0x1c6   : > { %4377 = vmatpush3.msk.msra.mxu0 %vm747_vm1, %v2046_v49  ;;  %4364 = vmatprep.mubr.msk.f32.mxu0 %vm587_vm0, %v5984_v60  ;;  %v4797_v60 = vpack.c.bf16 %v2366_v59, %v2365_v58 }
 0x1c7   : > { %4790 = vmatprep.subr.bf16.mxu0 %v4789_v54 }
 0x1c9   : > { %4365 = vmatmul.mubr.msk.f32.gmra.mrb[2].mxu0 %vm587_vm0, %v5999_v1  ;;  %v2044_v1 = vld [vmem:[#allocation2 + $0xb2] sm:$0xff] }
 0x1ca   : > { %4367 = vmatprep.mubr.msk.f32.mxu0 %vm587_vm0, %v6001_v6  ;;  %v2601_v6 = vld [vmem:[#allocation12 + $0x128] sm:$0xff] }
 0x1cd   : > { %4368 = vmatmul.mubr.msk.f32.gmra.mrb[4].mxu0 %vm587_vm0, %v6011_v7  ;;  %v4861_v7 = vpack.c.bf16 %v2601_v6, %v2600_v5 }
 0x1ce   : > { %4370 = vmatprep.mubr.msk.f32.mxu0 %vm587_vm0, %v6013_v12  ;;  %v2603_v12 = vld [vmem:[#allocation12 + $0x138] sm:$0xff] }
 0x1cf   : > { %4862 = vmatprep.subr.bf16.mxu1 %v4861_v7 }
 0x1d0   : > { %4864 = vmatpush3.bf16.msra.mxu1 %v4861_v7 }
 0x1d1   : > { %4371 = vmatmul.mubr.msk.f32.gmra.mrb[6].mxu0 %vm587_vm0, %v6023_v13  ;;  %v4865_v13 = vpack.c.bf16 %v2603_v12, %v2602_v10  ;;  %v2339_v10 = vld [vmem:[#allocation12 + $0x18] sm:$0xff] }
 0x1d2   : > { %4373 = vmatprep.mubr.msk.f32.mxu0 %vm587_vm0, %v1364_v19  ;;  %v4825_v23 = vpack.c.bf16 %v2339_v10, %v2338_v9 }
 0x1d3   : > { %4866 = vmatprep.subr.bf16.mxu1 %v4865_v13 }
 0x1d4   : > { %4868 = vmatpush3.bf16.msra.mxu1 %v4865_v13 }
 0x1d5   : > { %4374 = vmatmul.mubr.msk.f32.gmra.mrb[8].mxu0 %vm587_vm0, %v1874_v52  ;;  %4870 = vmatprep.subr.bf16.mxu1 %v4869_v20 }
 0x1d6   : > { %4378 = vmatprep.mubr.msk.f32.mxu0 %vm587_vm0, %v6066_v29  ;;  %v2608_v29 = vld [vmem:[#allocation12 + $0x160] sm:$0xff] }
 0x1d8   : > { %4872 = vmatpush3.bf16.msra.mxu1 %v4869_v20 }
 0x1d9   : > { %4379 = vmatmul.mubr.msk.f32.vlgmr.msra.gmra.mrb[0].mxu0 %vm587_vm0, %v6073_v31  ;;  %4874 = vmatprep.subr.bf16.mxu1 %v4873_v26  ;;  %v2609_v31 = vld [vmem:[#allocation12 + $0x168] sm:$0xff] }
 0x1da   : > { %4381 = vmatprep.mubr.msk.f32.mxu0 %vm587_vm0, %v6077_v32  ;;  %4792 = vmatpush3.bf16.msra.mxu0 %v4789_v54  ;;  %v4877_v32 = vpack.c.bf16 %v2609_v31, %v2608_v29  ;;  %v2341_v31 = vld [vmem:[#allocation12 + $0x28] sm:$0xff] }
 0x1db   : > { %4794 = vmatprep.subr.bf16.mxu0 %v4793_v57 }
 0x1dc   : > { %4876 = vmatpush3.bf16.msra.mxu1 %v4873_v26 }
 0x1dd   : > { %4382 = vmatmul.mubr.msk.f32.gmra.mrb[2].mxu0 %vm587_vm0, %v6081_v33  ;;  %4878 = vmatprep.subr.bf16.mxu1 %v4877_v32  ;;  %v2610_v33 = vld [vmem:[#allocation12 + $0x170] sm:$0xff] }
 0x1de   : > { %4384 = vmatprep.mubr.msk.f32.mxu0 %vm587_vm0, %v6085_v34  ;;  %4796 = vmatpush3.bf16.msra.mxu0 %v4793_v57  ;;  %v2611_v34 = vld [vmem:[#allocation12 + $0x178] sm:$0xff] }
 0x1df   : > { %4798 = vmatprep.subr.bf16.mxu0 %v4797_v60  ;;  %v4881_v35 = vpack.c.bf16 %v2611_v34, %v2610_v33 }
 0x1e0   : > { %4880 = vmatpush3.bf16.msra.mxu1 %v4877_v32 }
 0x1e1   : > { %4385 = vmatmul.mubr.msk.f32.gmra.mrb[4].mxu0 %vm587_vm0, %v6089_v37  ;;  %4882 = vmatprep.subr.bf16.mxu1 %v4881_v35  ;;  %v2736_v37 = vld [vmem:[#allocation12 + $0x188] sm:$0xff] }
 0x1e2   : > { %4387 = vmatprep.mubr.msk.f32.mxu0 %vm587_vm0, %v6093_v40  ;;  %4800 = vmatpush3.bf16.msra.mxu0 %v4797_v60  ;;  %v6222_v38 = vpack.c.bf16 %v2736_v37, %v2735_v36 }
 0x1e3   : > { %4802 = vmatprep.subr.bf16.mxu0 %v4801_v63 }
 0x1e4   : > { %4884 = vmatpush3.bf16.msra.mxu1 %v4881_v35 }
 0x1e5   : > { %4388 = vmatmul.mubr.msk.f32.gmra.mrb[6].mxu0 %vm587_vm0, %v6097_v43  ;;  %4886 = vmatprep.subr.bf16.mxu1 %v6222_v38 }
 0x1e6   : > { %4390 = vmatprep.mubr.msk.f32.mxu0 %vm587_vm0, %v1534_v48  ;;  %4804 = vmatpush3.bf16.msra.mxu0 %v4801_v63 }
 0x1e7   : > { %4806 = vmatprep.subr.bf16.mxu0 %v4805_v4 }
 0x1e9   : > { %4391 = vmatmul.mubr.msk.f32.gmra.mrb[8].mxu0 %vm587_vm0, %v2044_v1 }
 0x1ea   : > { %4808 = vmatpush3.bf16.msra.mxu0 %v4805_v4 }
 0x1eb   : > { %4810 = vmatprep.subr.bf16.mxu0 %v4809_v11 }
 0x1ee   : > { %4812 = vmatpush3.bf16.msra.mxu0 %v4809_v11 }
 0x1ef   : > { %4814 = vmatprep.subr.bf16.mxu0 %v4813_v17 }
 0x1f2   : > { %4816 = vmatpush3.bf16.msra.mxu0 %v4813_v17 }
 0x1f3   : > { %4818 = vmatprep.subr.bf16.mxu0 %v4817_v24 }
 0x1f6   : > { %4820 = vmatpush3.bf16.msra.mxu0 %v4817_v24  ;;  %v2340_v24 = vld [vmem:[#allocation12 + $0x20] sm:$0xff] }
 0x1f7   : > { %4822 = vmatprep.subr.bf16.mxu0 %v6219_v30 }
 0x2ac   : > { %v4380_v40 = vpop.f32.mrb[0].mxu0 }
 0x2ad   : > { %v2213_v42 = vmul.f32 %v4380_v40, %v6228_v39  ;;  %v2146_v43 = vpop.f32.mrb[1].mxu0 }
 0x2ae   : > { %v2212_v44 = vmul.f32 %v6228_v39, %v2146_v43  ;;  %v2342_v43 = vld [vmem:[#allocation12 + $0x30] sm:$0xff] }
 0x2af   : > { %v2230_v45 = vadd.f32 %v6233_v41, %v2213_v42  ;;  %v4829_v42 = vpack.c.bf16 %v2341_v31, %v2340_v24  ;;  %v2349_v24 = vld [vmem:[#allocation12 + $0x68] sm:$0xff]  ;;  %v2746_v31 = vld [vmem:[#allocation12 + $0x1d8] sm:$0xff] }
 0x2b0   : > { %v2229_v46 = vadd.f32 %v6233_v41, %v2212_v44  ;;  %v4383_v19 = vpop.f32.mrb[2].mxu0  ;;  %v2343_v44 = vld [vmem:[#allocation12 + $0x38] sm:$0xff] }
 0x2b1   : > { %vm2240_vm3 = vcmp.gt.f32.partialorder %v2230_v45, 0.0  ;;  %v2250_v47 = vmul.f32 0.01, %v2230_v45  ;;  %v2215_v48 = vmul.f32 %v4383_v19, %v6228_v39  ;;  %v2156_v49 = vpop.f32.mrb[3].mxu0  ;;  %v2738_v19 = vld [vmem:[#allocation12 + $0x198] sm:$0xff] }
 0x2b2   : > { %vm2239_vm4 = vcmp.gt.f32.partialorder %v2229_v46, 0.0  ;;  %v2249_v50 = vmul.f32 0.01, %v2229_v46  ;;  %v2214_v51 = vmul.f32 %v6228_v39, %v2156_v49 }
 0x2b3   : > { %v6241_v53 = vsel %vm2240_vm3, %v2230_v45, %v2250_v47  ;;  %v2232_v54 = vadd.f32 %v6233_v41, %v2215_v48 }
 0x2b4   : > { %2270 = vst [vmem:[#allocation3 + $0x11] sm:$0xff] %v6241_v53  ;;  %v2259_v52 = vsel %vm2239_vm4, %v2229_v46, %v2249_v50  ;;  %v2231_v55 = vadd.f32 %v6233_v41, %v2214_v51  ;;  %v4386_v56 = vpop.f32.mrb[4].mxu0  ;;  %v2737_v46 = vld [vmem:[#allocation12 + $0x190] sm:$0xff] }
 0x2b5   : > { %2269 = vst [vmem:[#allocation3 + $0x1] sm:$0xff] %v2259_v52  ;;  %vm2242_vm5 = vcmp.gt.f32.partialorder %v2232_v54, 0.0  ;;  %v2252_v57 = vmul.f32 0.01, %v2232_v54  ;;  %v2217_v58 = vmul.f32 %v4386_v56, %v6228_v39  ;;  %v2166_v59 = vpop.f32.mrb[5].mxu0  ;;  %v4833_v52 = vpack.c.bf16 %v2343_v44, %v2342_v43  ;;  %v2749_v43 = vld [vmem:[#allocation12 + $0x1f0] sm:$0xff] }
 0x2b6   : > { %2283 = vst [vmem:[#allocation3] sm:$0xff] %v5569_v0  ;;  %2284 = vst [vmem:[#allocation3 + $0x8] sm:$0x3] %v5569_v0  ;;  %vm2241_vm6 = vcmp.gt.f32.partialorder %v2231_v55, 0.0  ;;  %v2251_v60 = vmul.f32 0.01, %v2231_v55  ;;  %v2216_v61 = vmul.f32 %v6228_v39, %v2166_v59  ;;  %v4889_v56 = vpack.c.bf16 %v2738_v19, %v2737_v46 }
 0x2b7   : > { %v6250_v62 = vsel %vm2242_vm5, %v2232_v54, %v2252_v57  ;;  %v2234_v63 = vadd.f32 %v6233_v41, %v2217_v58  ;;  %v2345_v57 = vld [vmem:[#allocation12 + $0x48] sm:$0xff]  ;;  %v2750_v44 = vld [vmem:[#allocation12 + $0x1f8] sm:$0xff]  ;;  %v2873_v46 = vld [vmem:[#allocation12 + $0x200] sm:$0xff] }
 0x2b8   : > { %2272 = vst [vmem:[#allocation3 + $0x31] sm:$0xff] %v6250_v62  ;;  %v6254_v1 = vsel %vm2241_vm6, %v2231_v55, %v2251_v60  ;;  %v2233_v2 = vadd.f32 %v6233_v41, %v2216_v61  ;;  %v4389_v3 = vpop.f32.mrb[6].mxu0  ;;  %v2344_v55 = vld [vmem:[#allocation12 + $0x40] sm:$0xff]  ;;  %v2740_v58 = vld [vmem:[#allocation12 + $0x1a8] sm:$0xff] }
 0x2b9   : > { %2271 = vst [vmem:[#allocation3 + $0x21] sm:$0xff] %v6254_v1  ;;  %vm2244_vm7 = vcmp.gt.f32.partialorder %v2234_v63, 0.0  ;;  %v2254_v4 = vmul.f32 0.01, %v2234_v63  ;;  %v2219_v5 = vmul.f32 %v4389_v3, %v6228_v39  ;;  %v2176_v6 = vpop.f32.mrb[7].mxu0  ;;  %v2874_v19 = vld [vmem:[#allocation12 + $0x208] sm:$0xff] }
 0x2ba   : > { %vm2243_vm8 = vcmp.gt.f32.partialorder %v2233_v2, 0.0  ;;  %v2253_v7 = vmul.f32 0.01, %v2233_v2  ;;  %v2218_v8 = vmul.f32 %v6228_v39, %v2176_v6  ;;  %v2346_v6 = vld [vmem:[#allocation12 + $0x50] sm:$0xff] }
 0x2bb   : > { %v6260_v11 = vsel %vm2244_vm7, %v2234_v63, %v2254_v4  ;;  %v2236_v12 = vadd.f32 %v6233_v41, %v2219_v5  ;;  %v2309_v13 = vld [vmem:[#allocation3 + $0x11] sm:$0x1]  ;;  %v2289_v14 = vld [vmem:[#allocation3 + $0x18] sm:$0x1]  ;;  %v4837_v4 = vpack.c.bf16 %v2345_v57, %v2344_v55  ;;  %v2877_v57 = vld [vmem:[#allocation12 + $0x220] sm:$0xff] }
 0x2bc   : > { %2274 = vst [vmem:[#allocation3 + $0x51] sm:$0xff] %v6260_v11  ;;  %v6264_v15 = vsel %vm2243_vm8, %v2233_v2, %v2253_v7  ;;  %v2235_v16 = vadd.f32 %v6233_v41, %v2218_v8  ;;  %v4392_v17 = vpop.f32.mrb[8].mxu0  ;;  %2319 = vst [vmem:[#allocation3 + $0x19] sm:$0x1] %v2309_v13  ;;  %v2741_v7 = vld [vmem:[#allocation12 + $0x1b0] sm:$0xff]  ;;  %v2742_v8 = vld [vmem:[#allocation12 + $0x1b8] sm:$0xff] }
 0x2bd   : > { %2299 = vst [vmem:[#allocation3 + $0x10] sm:$0x1] %v2289_v14  ;;  %v2288_v18 = vld [vmem:[#allocation3 + $0x8] sm:$0x1]  ;;  %v2308_v20 = vld [vmem:[#allocation3 + $0x1] sm:$0x1]  ;;  %v2221_v21 = vmul.f32 %v4392_v17, %v6228_v39 }
 0x2be   : > { %2273 = vst [vmem:[#allocation3 + $0x41] sm:$0xff] %v6264_v15  ;;  %vm2246_vm9 = vcmp.gt.f32.partialorder %v2236_v12, 0.0  ;;  %v2186_v22 = vpop.f32.mrb[9].mxu0  ;;  %2298 = vst [vmem:[#allocation3] sm:$0x1] %v2288_v18  ;;  %vm2245_vm10 = vcmp.gt.f32.partialorder %v2235_v16, 0.0 }
 0x2bf   : > { %2318 = vst [vmem:[#allocation3 + $0x9] sm:$0x1] %v2308_v20  ;;  %v2256_v25 = vmul.f32 0.01, %v2236_v12  ;;  %v2255_v26 = vmul.f32 0.01, %v2235_v16  ;;  %v2220_v27 = vmul.f32 %v6228_v39, %v2186_v22  ;;  %v2238_v29 = vadd.f32 %v6233_v41, %v2221_v21 }
 0x2c0   : > { %v2352_v28 = vld [vmem:[#allocation3 + $0x1] sm:$0xff]  ;;  %v2311_v32 = vld [vmem:[#allocation3 + $0x31] sm:$0x1]  ;;  %v2291_v33 = vld [vmem:[#allocation3 + $0x38] sm:$0x1]  ;;  %v4897_v20 = vpack.c.bf16 %v2742_v8, %v2741_v7 }
 0x2c1   : > { %4425 = vmatprep.mubr.f32.mxu0 %v2352_v28  ;;  %v6272_v34 = vsel %vm2246_vm9, %v2236_v12, %v2256_v25  ;;  %v6274_v35 = vsel %vm2245_vm10, %v2235_v16, %v2255_v26  ;;  %v2237_v36 = vadd.f32 %v6233_v41, %v2220_v27  ;;  %v2310_v37 = vld [vmem:[#allocation3 + $0x21] sm:$0x1]  ;;  %2321 = vst [vmem:[#allocation3 + $0x39] sm:$0x1] %v2311_v32  ;;  %v2290_v40 = vld [vmem:[#allocation3 + $0x28] sm:$0x1] }
 0x2c2   : > { %4426 = vmatmul.mubr.f32.vlgmr.msra.gmra.mrb[10].mxu0 %v6241_v53  ;;  %2301 = vst [vmem:[#allocation3 + $0x30] sm:$0x1] %v2291_v33  ;;  %2276 = vst [vmem:[#allocation3 + $0x71] sm:$0xff] %v6272_v34  ;;  %vm2248_vm11 = vcmp.gt.f32.partialorder %v2238_v29, 0.0  ;;  %v2258_v39 = vmul.f32 0.01, %v2238_v29 }
 0x2c3   : > { %2275 = vst [vmem:[#allocation3 + $0x61] sm:$0xff] %v6274_v35  ;;  %4824 = vmatpush3.bf16.msra.mxu0 %v6219_v30  ;;  %4428 = vmatprep.mubr.f32.mxu0 %v6254_v1  ;;  %2320 = vst [vmem:[#allocation3 + $0x29] sm:$0x1] %v2310_v37  ;;  %vm2247_vm12 = vcmp.gt.f32.partialorder %v2237_v36, 0.0  ;;  %v2257_v41 = vmul.f32 0.01, %v2237_v36 }
 0x2c4   : > { %2300 = vst [vmem:[#allocation3 + $0x20] sm:$0x1] %v2290_v40  ;;  %4826 = vmatprep.subr.bf16.mxu0 %v4825_v23  ;;  %v2268_v45 = vsel %vm2248_vm11, %v2238_v29, %v2258_v39  ;;  %v2313_v47 = vld [vmem:[#allocation3 + $0x51] sm:$0x1]  ;;  %v2293_v50 = vld [vmem:[#allocation3 + $0x58] sm:$0x1] }
 0x2c5   : > { %2278 = vst [vmem:[#allocation3 + $0x91] sm:$0xff] %v2268_v45  ;;  %v6282_v48 = vsel %vm2247_vm12, %v2237_v36, %v2257_v41  ;;  %v2312_v30 = vld [vmem:[#allocation3 + $0x41] sm:$0x1]  ;;  %2323 = vst [vmem:[#allocation3 + $0x59] sm:$0x1] %v2313_v47  ;;  %v6289_v54 = vld [vmem:[#allocation3 + $0x12] sm:$0xff]  ;;  %v4913_v45 = vpack.c.bf16 %v2750_v44, %v2749_v43 }
 0x2c6   : > { %4429 = vmatmul.mubr.f32.gmra.mrb[12].mxu0 %v6250_v62  ;;  %v2292_v49 = vld [vmem:[#allocation3 + $0x48] sm:$0x1]  ;;  %2286 = vst [vmem:[#allocation3 + $0x90] sm:$0xff] %v5569_v0  ;;  %2287 = vst [vmem:[#allocation3 + $0x98] sm:$0x3] %v5569_v0  ;;  %v2328_v9 = vld [vmem:[#allocation3] sm:$0xff] }
 0x2c7   : > { %2277 = vst [vmem:[#allocation3 + $0x81] sm:$0xff] %v6282_v48  ;;  %4828 = vmatpush3.bf16.msra.mxu0 %v4825_v23  ;;  %4431 = vmatprep.mubr.f32.mxu0 %v6264_v15  ;;  %v2587_v51 = vld [vmem:[#allocation3 + $0x2] sm:$0xff]  ;;  %2322 = vst [vmem:[#allocation3 + $0x49] sm:$0x1] %v2312_v30  ;;  %v2744_v21 = vld [vmem:[#allocation12 + $0x1c8] sm:$0xff]  ;;  %v4917_v30 = vpack.c.bf16 %v2874_v19, %v2873_v46 }
 0x2c8   : > { %2302 = vst [vmem:[#allocation3 + $0x40] sm:$0x1] %v2292_v49  ;;  %2303 = vst [vmem:[#allocation3 + $0x50] sm:$0x1] %v2293_v50  ;;  %4830 = vmatprep.subr.bf16.mxu0 %v4829_v42  ;;  %4513 = vmatprep.mubr.f32.mxu1 %v2587_v51  ;;  %v2739_v0 = vld [vmem:[#allocation12 + $0x1a0] sm:$0xff]  ;;  %v6298_v3 = vld [vmem:[#allocation3 + $0x32] sm:$0xff] }
 0x2c9   : > { %4514 = vmatmul.mubr.f32.vlgmr.msra.gmra.mrb[0].mxu1 %v6289_v54  ;;  %v2315_v61 = vld [vmem:[#allocation3 + $0x71] sm:$0x1]  ;;  %v2295_v2 = vld [vmem:[#allocation3 + $0x78] sm:$0x1]  ;;  %v4893_v5 = vpack.c.bf16 %v2740_v58, %v2739_v0  ;;  %v2743_v14 = vld [vmem:[#allocation12 + $0x1c0] sm:$0xff] }
 0x2ca   : > { %4432 = vmatmul.mubr.f32.gmra.mrb[14].mxu0 %v6260_v11  ;;  %4888 = vmatpush3.bf16.msra.mxu1 %v6222_v38  ;;  %v6294_v59 = vld [vmem:[#allocation3 + $0x22] sm:$0xff]  ;;  %v2314_v60 = vld [vmem:[#allocation3 + $0x61] sm:$0x1]  ;;  %2325 = vst [vmem:[#allocation3 + $0x79] sm:$0x1] %v2315_v61  ;;  %v4901_v26 = vpack.c.bf16 %v2744_v21, %v2743_v14  ;;  %v2745_v29 = vld [vmem:[#allocation12 + $0x1d0] sm:$0xff] }
 0x2cb   : > { %4832 = vmatpush3.bf16.msra.mxu0 %v4829_v42  ;;  %4434 = vmatprep.mubr.f32.mxu0 %v6274_v35  ;;  %2324 = vst [vmem:[#allocation3 + $0x69] sm:$0x1] %v2314_v60  ;;  %v2294_v63 = vld [vmem:[#allocation3 + $0x68] sm:$0x1]  ;;  %v2347_v38 = vld [vmem:[#allocation12 + $0x58] sm:$0xff]  ;;  %v2726_v32 = vld [vmem:[#allocation3 + $0x10] sm:$0xff]  ;;  %v4905_v37 = vpack.c.bf16 %v2746_v31, %v2745_v29 }
 0x2cc   : > { %4516 = vmatprep.mubr.f32.mxu1 %v6294_v59  ;;  %4834 = vmatprep.subr.bf16.mxu0 %v4833_v52  ;;  %2304 = vst [vmem:[#allocation3 + $0x60] sm:$0x1] %v2294_v63  ;;  %2305 = vst [vmem:[#allocation3 + $0x70] sm:$0x1] %v2295_v2  ;;  %v6305_v17 = vld [vmem:[#allocation3 + $0x52] sm:$0xff]  ;;  %v4841_v18 = vpack.c.bf16 %v2347_v38, %v2346_v6  ;;  %v2348_v23 = vld [vmem:[#allocation12 + $0x60] sm:$0xff] }
 0x2cd   : > { %4890 = vmatprep.subr.bf16.mxu1 %v4889_v56  ;;  %4517 = vmatmul.mubr.f32.gmra.mrb[2].mxu1 %v6298_v3  ;;  %v2297_v10 = vld [vmem:[#allocation3 + $0x98] sm:$0x1]  ;;  %v2317_v12 = vld [vmem:[#allocation3 + $0x91] sm:$0x1]  ;;  %v4845_v28 = vpack.c.bf16 %v2349_v24, %v2348_v23  ;;  %v2351_v36 = vld [vmem:[#allocation12 + $0x78] sm:$0xff] }
 0x2ce   : > { %4435 = vmatmul.mubr.f32.gmra.mrb[16].mxu0 %v6272_v34  ;;  %4892 = vmatpush3.bf16.msra.mxu1 %v4889_v56  ;;  %v6302_v13 = vld [vmem:[#allocation3 + $0x42] sm:$0xff]  ;;  %2307 = vst [vmem:[#allocation3 + $0x90] sm:$0x1] %v2297_v10  ;;  %2327 = vst [vmem:[#allocation3 + $0x99] sm:$0x1] %v2317_v12  ;;  %v2350_v33 = vld [vmem:[#allocation12 + $0x70] sm:$0xff] }
 0x2cf   : > { %4836 = vmatpush3.bf16.msra.mxu0 %v4833_v52  ;;  %4519 = vmatprep.mubr.f32.mxu1 %v6302_v13  ;;  %v2296_v16 = vld [vmem:[#allocation3 + $0x88] sm:$0x1]  ;;  %v2316_v22 = vld [vmem:[#allocation3 + $0x81] sm:$0x1]  ;;  %v4849_v40 = vpack.c.bf16 %v2351_v36, %v2350_v33  ;;  %v2748_v41 = vld [vmem:[#allocation12 + $0x1e8] sm:$0xff] }
 0x2d0   : > { %4838 = vmatprep.subr.bf16.mxu0 %v4837_v4  ;;  %4894 = vmatprep.subr.bf16.mxu1 %v4893_v5  ;;  %2306 = vst [vmem:[#allocation3 + $0x80] sm:$0x1] %v2296_v16  ;;  %2326 = vst [vmem:[#allocation3 + $0x89] sm:$0x1] %v2316_v22  ;;  %v2747_v39 = vld [vmem:[#allocation12 + $0x1e0] sm:$0xff]  ;;  %v6317_v49 = vld [vmem:[#allocation3 + $0x30] sm:$0xff] }
 0x2d1   : > { %4520 = vmatmul.mubr.f32.gmra.mrb[4].mxu1 %v6305_v17  ;;  %4469 = vmatprep.mubr.f32.mxu0 %v2328_v9  ;;  %v6311_v27 = vld [vmem:[#allocation3 + $0x72] sm:$0xff]  ;;  %v4909_v42 = vpack.c.bf16 %v2748_v41, %v2747_v39  ;;  %v6314_v47 = vld [vmem:[#allocation3 + $0x20] sm:$0xff] }
 0x2d2   : > { %4896 = vmatpush3.bf16.msra.mxu1 %v4893_v5  ;;  %v6308_v25 = vld [vmem:[#allocation3 + $0x62] sm:$0xff]  ;;  %v2875_v50 = vld [vmem:[#allocation12 + $0x210] sm:$0xff]  ;;  %v2878_v0 = vld [vmem:[#allocation12 + $0x228] sm:$0xff] }
 0x2d3   : > { %4840 = vmatpush3.bf16.msra.mxu0 %v4837_v4  ;;  %4522 = vmatprep.mubr.f32.mxu1 %v6308_v25  ;;  %v2876_v51 = vld [vmem:[#allocation12 + $0x218] sm:$0xff]  ;;  %v6323_v56 = vld [vmem:[#allocation3 + $0x50] sm:$0xff]  ;;  %v4925_v60 = vpack.c.bf16 %v2878_v0, %v2877_v57  ;;  %v2881_v5 = vld [vmem:[#allocation12 + $0x240] sm:$0xff] }
 0x2d4   : > { %4842 = vmatprep.subr.bf16.mxu0 %v4841_v18  ;;  %4898 = vmatprep.subr.bf16.mxu1 %v4897_v20  ;;  %v6320_v52 = vld [vmem:[#allocation3 + $0x40] sm:$0xff]  ;;  %v4921_v55 = vpack.c.bf16 %v2876_v51, %v2875_v50  ;;  %v6331_v61 = vld [vmem:[#allocation3 + $0x70] sm:$0xff] }
 0x2d5   : > { %4523 = vmatmul.mubr.f32.gmra.mrb[6].mxu1 %v6311_v27  ;;  %v6327_v58 = vld [vmem:[#allocation3 + $0x60] sm:$0xff]  ;;  %v2879_v63 = vld [vmem:[#allocation12 + $0x230] sm:$0xff]  ;;  %v2882_v6 = vld [vmem:[#allocation12 + $0x248] sm:$0xff] }
 0x2d6   : > { %4900 = vmatpush3.bf16.msra.mxu1 %v4897_v20  ;;  %4557 = vmatprep.mubr.f32.mxu1 %v2726_v32  ;;  %v2880_v2 = vld [vmem:[#allocation12 + $0x238] sm:$0xff]  ;;  %v4933_v7 = vpack.c.bf16 %v2882_v6, %v2881_v5  ;;  %v2883_v8 = vld [vmem:[#allocation12 + $0x250] sm:$0xff]  ;;  %v2885_v12 = vld [vmem:[#allocation12 + $0x260] sm:$0xff] }
 0x2d7   : > { %4844 = vmatpush3.bf16.msra.mxu0 %v4841_v18  ;;  %4902 = vmatprep.subr.bf16.mxu1 %v4901_v26  ;;  %v4929_v4 = vpack.c.bf16 %v2880_v2, %v2879_v63  ;;  %v6338_v38 = vld [vmem:[#allocation3 + $0x80] sm:$0xff]  ;;  %v2886_v14 = vld [vmem:[#allocation12 + $0x268] sm:$0xff]  ;;  %v2887_v18 = vld [vmem:[#allocation12 + $0x270] sm:$0xff] }
 0x2d8   : > { %4846 = vmatprep.subr.bf16.mxu0 %v4845_v28  ;;  %v2884_v9 = vld [vmem:[#allocation12 + $0x258] sm:$0xff]  ;;  %v4941_v16 = vpack.c.bf16 %v2886_v14, %v2885_v12  ;;  %v3011_v22 = vld [vmem:[#allocation12 + $0x280] sm:$0xff]  ;;  %v3012_v23 = vld [vmem:[#allocation12 + $0x288] sm:$0xff] }
 0x2d9   : > { %v4937_v10 = vpack.c.bf16 %v2884_v9, %v2883_v8  ;;  %v2888_v20 = vld [vmem:[#allocation12 + $0x278] sm:$0xff]  ;;  %v4949_v24 = vpack.c.bf16 %v3012_v23, %v3011_v22  ;;  %v3015_v29 = vld [vmem:[#allocation12 + $0x2a0] sm:$0xff]  ;;  %v3016_v31 = vld [vmem:[#allocation12 + $0x2a8] sm:$0xff] }
 0x2da   : > { %4904 = vmatpush3.bf16.msra.mxu1 %v4901_v26  ;;  %v4945_v21 = vpack.c.bf16 %v2888_v20, %v2887_v18  ;;  %v3013_v26 = vld [vmem:[#allocation12 + $0x290] sm:$0xff]  ;;  %v3018_v36 = vld [vmem:[#allocation12 + $0x2b8] sm:$0xff]  ;;  %v3020_v39 = vld [vmem:[#allocation12 + $0x2c8] sm:$0xff] }
 0x2db   : > { %4848 = vmatpush3.bf16.msra.mxu0 %v4845_v28  ;;  %4906 = vmatprep.subr.bf16.mxu1 %v4905_v37  ;;  %v3017_v33 = vld [vmem:[#allocation12 + $0x2b0] sm:$0xff]  ;;  %v3022_v43 = vld [vmem:[#allocation12 + $0x2d8] sm:$0xff]  ;;  %v3024_v46 = vld [vmem:[#allocation12 + $0x2e8] sm:$0xff] }
 0x2dc   : > { %4850 = vmatprep.subr.bf16.mxu0 %v4849_v40  ;;  %v3026_v50 = vld [vmem:[#allocation12 + $0x2f8] sm:$0xff]  ;;  %v3151_v57 = vld [vmem:[#allocation12 + $0x308] sm:$0xff]  ;;  %v3154_v2 = vld [vmem:[#allocation12 + $0x320] sm:$0xff] }
 0x2dd   : > { %v3153_v63 = vld [vmem:[#allocation12 + $0x318] sm:$0xff]  ;;  %v3156_v6 = vld [vmem:[#allocation12 + $0x330] sm:$0xff]  ;;  %v3158_v9 = vld [vmem:[#allocation12 + $0x340] sm:$0xff] }
 0x2de   : > { %4908 = vmatpush3.bf16.msra.mxu1 %v4905_v37  ;;  %v4961_v37 = vpack.c.bf16 %v3018_v36, %v3017_v33  ;;  %v6356_v14 = vld [vmem:[#allocation3 + $0x82] sm:$0xff]  ;;  %v3163_v22 = vld [vmem:[#allocation12 + $0x368] sm:$0xff] }
 0x2df   : > { %4852 = vmatpush3.bf16.msra.mxu0 %v4849_v40  ;;  %4910 = vmatprep.subr.bf16.mxu1 %v4909_v42  ;;  %v3019_v40 = vld [vmem:[#allocation12 + $0x2c0] sm:$0xff]  ;;  %v3161_v18 = vld [vmem:[#allocation12 + $0x358] sm:$0xff] }
 0x2e0   : > { %v4965_v41 = vpack.c.bf16 %v3020_v39, %v3019_v40  ;;  %v3291_v33 = vld [vmem:[#allocation12 + $0x398] sm:$0xff]  ;;  %v3292_v36 = vld [vmem:[#allocation12 + $0x3a0] sm:$0xff]  ;;  %v3294_v39 = vld [vmem:[#allocation12 + $0x3b0] sm:$0xff] }
 0x2e2   : > { %4470 = vmatmul.mubr.f32.vlgmr.msra.gmra.mrb[10].mxu0 %v2726_v32  ;;  %4912 = vmatpush3.bf16.msra.mxu1 %v4909_v42  ;;  %v4957_v32 = vpack.c.bf16 %v3016_v31, %v3015_v29  ;;  %v3021_v42 = vld [vmem:[#allocation12 + $0x2d0] sm:$0xff]  ;;  %v3289_v29 = vld [vmem:[#allocation12 + $0x388] sm:$0xff] }
 0x2e3   : > { %4472 = vmatprep.mubr.f32.mxu0 %v6314_v47  ;;  %4914 = vmatprep.subr.bf16.mxu1 %v4913_v45  ;;  %v4969_v44 = vpack.c.bf16 %v3022_v43, %v3021_v42  ;;  %v3296_v43 = vld [vmem:[#allocation12 + $0x3c0] sm:$0xff] }
 0x2e6   : > { %4473 = vmatmul.mubr.f32.gmra.mrb[12].mxu0 %v6317_v49  ;;  %4916 = vmatpush3.bf16.msra.mxu1 %v4913_v45  ;;  %v3023_v45 = vld [vmem:[#allocation12 + $0x2e0] sm:$0xff] }
 0x2e7   : > { %4475 = vmatprep.mubr.f32.mxu0 %v6320_v52  ;;  %4918 = vmatprep.subr.bf16.mxu1 %v4917_v30  ;;  %v4973_v19 = vpack.c.bf16 %v3024_v46, %v3023_v45  ;;  %v3298_v45 = vld [vmem:[#allocation12 + $0x3d0] sm:$0xff]  ;;  %v3299_v46 = vld [vmem:[#allocation12 + $0x3d8] sm:$0xff] }
 0x2e9   : > { %4558 = vmatmul.mubr.f32.vlgmr.msra.gmra.mrb[0].mxu1 %v6314_v47 }
 0x2ea   : > { %4476 = vmatmul.mubr.f32.gmra.mrb[14].mxu0 %v6323_v56  ;;  %4560 = vmatprep.mubr.f32.mxu1 %v6317_v49 }
 0x2eb   : > { %4478 = vmatprep.mubr.f32.mxu0 %v6327_v58  ;;  %4920 = vmatpush3.bf16.msra.mxu1 %v4917_v30  ;;  %v3025_v30 = vld [vmem:[#allocation12 + $0x2f0] sm:$0xff] }
 0x2ec   : > { %4922 = vmatprep.subr.bf16.mxu1 %v4921_v55  ;;  %v4977_v51 = vpack.c.bf16 %v3026_v50, %v3025_v30  ;;  %v3303_v50 = vld [vmem:[#allocation12 + $0x3f8] sm:$0xff] }
 0x2ed   : > { %4561 = vmatmul.mubr.f32.gmra.mrb[2].mxu1 %v6320_v52 }
 0x2ee   : > { %4479 = vmatmul.mubr.f32.gmra.mrb[16].mxu0 %v6331_v61  ;;  %4563 = vmatprep.mubr.f32.mxu1 %v6323_v56 }
 0x2ef   : > { %4924 = vmatpush3.bf16.msra.mxu1 %v4921_v55  ;;  %v3150_v55 = vld [vmem:[#allocation12 + $0x300] sm:$0xff] }
 0x2f0   : > { %4926 = vmatprep.subr.bf16.mxu1 %v4925_v60  ;;  %v4981_v0 = vpack.c.bf16 %v3151_v57, %v3150_v55  ;;  %v3427_v55 = vld [vmem:[#allocation12 + $0x408] sm:$0xff] }
 0x2f1   : > { %4564 = vmatmul.mubr.f32.gmra.mrb[4].mxu1 %v6327_v58 }
 0x2f2   : > { %4566 = vmatprep.mubr.f32.mxu1 %v6331_v61 }
 0x2f3   : > { %4928 = vmatpush3.bf16.msra.mxu1 %v4925_v60  ;;  %v3152_v60 = vld [vmem:[#allocation12 + $0x310] sm:$0xff] }
 0x2f4   : > { %4930 = vmatprep.subr.bf16.mxu1 %v4929_v4 }
 0x2f5   : > { %4567 = vmatmul.mubr.f32.gmra.mrb[6].mxu1 %v6338_v38 }
 0x2f6   : > { %4601 = vmatprep.mubr.f32.mxu1 %v6241_v53  ;;  %v3014_v53 = vld [vmem:[#allocation12 + $0x298] sm:$0xff] }
 0x2f7   : > { %4932 = vmatpush3.bf16.msra.mxu1 %v4929_v4  ;;  %v4953_v28 = vpack.c.bf16 %v3014_v53, %v3013_v26  ;;  %v3155_v4 = vld [vmem:[#allocation12 + $0x328] sm:$0xff]  ;;  %v3165_v26 = vld [vmem:[#allocation12 + $0x378] sm:$0xff] }
 0x2f8   : > { %4934 = vmatprep.subr.bf16.mxu1 %v4933_v7  ;;  %v4989_v5 = vpack.c.bf16 %v3155_v4, %v3154_v2  ;;  %v3432_v4 = vld [vmem:[#allocation12 + $0x430] sm:$0xff] }
 0x2fb   : > { %4936 = vmatpush3.bf16.msra.mxu1 %v4933_v7  ;;  %v3157_v7 = vld [vmem:[#allocation12 + $0x338] sm:$0xff] }
 0x2fc   : > { %4938 = vmatprep.subr.bf16.mxu1 %v4937_v10  ;;  %v4993_v8 = vpack.c.bf16 %v3157_v7, %v3156_v6  ;;  %v3434_v7 = vld [vmem:[#allocation12 + $0x440] sm:$0xff] }
 0x2ff   : > { %4940 = vmatpush3.bf16.msra.mxu1 %v4937_v10  ;;  %v3159_v10 = vld [vmem:[#allocation12 + $0x348] sm:$0xff] }
 0x300   : > { %4942 = vmatprep.subr.bf16.mxu1 %v4941_v16  ;;  %v4997_v12 = vpack.c.bf16 %v3159_v10, %v3158_v9  ;;  %v3436_v9 = vld [vmem:[#allocation12 + $0x450] sm:$0xff]  ;;  %v3437_v10 = vld [vmem:[#allocation12 + $0x458] sm:$0xff] }
 0x303   : > { %4944 = vmatpush3.bf16.msra.mxu1 %v4941_v16  ;;  %v3160_v16 = vld [vmem:[#allocation12 + $0x350] sm:$0xff] }
 0x304   : > { %4946 = vmatprep.subr.bf16.mxu1 %v4945_v21  ;;  %v5001_v20 = vpack.c.bf16 %v3161_v18, %v3160_v16  ;;  %v3441_v18 = vld [vmem:[#allocation12 + $0x478] sm:$0xff] }
 0x307   : > { %4948 = vmatpush3.bf16.msra.mxu1 %v4945_v21  ;;  %v3162_v21 = vld [vmem:[#allocation12 + $0x360] sm:$0xff] }
 0x308   : > { %4950 = vmatprep.subr.bf16.mxu1 %v4949_v24  ;;  %v5005_v23 = vpack.c.bf16 %v3163_v22, %v3162_v21 }
 0x30a   : > { %4602 = vmatmul.mubr.f32.vlgmr.msra.gmra.mrb[0].mxu1 %v6254_v1 }
 0x30b   : > { %4604 = vmatprep.mubr.f32.mxu1 %v6250_v62  ;;  %4952 = vmatpush3.bf16.msra.mxu1 %v4949_v24  ;;  %v3164_v24 = vld [vmem:[#allocation12 + $0x370] sm:$0xff] }
 0x30c   : > { %4954 = vmatprep.subr.bf16.mxu1 %v4953_v28  ;;  %v5009_v53 = vpack.c.bf16 %v3165_v26, %v3164_v24 }
 0x30e   : > { %4605 = vmatmul.mubr.f32.gmra.mrb[2].mxu1 %v6264_v15 }
 0x30f   : > { %4607 = vmatprep.mubr.f32.mxu1 %v6260_v11  ;;  %4956 = vmatpush3.bf16.msra.mxu1 %v4953_v28  ;;  %v3288_v28 = vld [vmem:[#allocation12 + $0x380] sm:$0xff] }
 0x310   : > { %4958 = vmatprep.subr.bf16.mxu1 %v4957_v32  ;;  %v5013_v31 = vpack.c.bf16 %v3289_v29, %v3288_v28 }
 0x312   : > { %4608 = vmatmul.mubr.f32.gmra.mrb[4].mxu1 %v6274_v35 }
 0x313   : > { %4610 = vmatprep.mubr.f32.mxu1 %v6272_v34  ;;  %4960 = vmatpush3.bf16.msra.mxu1 %v4957_v32  ;;  %v3290_v32 = vld [vmem:[#allocation12 + $0x390] sm:$0xff] }
 0x314   : > { %4962 = vmatprep.subr.bf16.mxu1 %v4961_v37 }
 0x316   : > { %4611 = vmatmul.mubr.f32.gmra.mrb[6].mxu1 %v6282_v48 }
 0x317   : > { %4964 = vmatpush3.bf16.msra.mxu1 %v4961_v37  ;;  %4645 = vmatprep.mubr.f32.mxu1 %v6289_v54  ;;  %v4985_v54 = vpack.c.bf16 %v3153_v63, %v3152_v60  ;;  %v3293_v37 = vld [vmem:[#allocation12 + $0x3a8] sm:$0xff]  ;;  %v3429_v60 = vld [vmem:[#allocation12 + $0x418] sm:$0xff]  ;;  %v3430_v63 = vld [vmem:[#allocation12 + $0x420] sm:$0xff] }
 0x318   : > { %4966 = vmatprep.subr.bf16.mxu1 %v4965_v41  ;;  %v5021_v40 = vpack.c.bf16 %v3293_v37, %v3292_v36 }
 0x31b   : > { %4968 = vmatpush3.bf16.msra.mxu1 %v4965_v41  ;;  %v3295_v41 = vld [vmem:[#allocation12 + $0x3b8] sm:$0xff] }
 0x31c   : > { %4970 = vmatprep.subr.bf16.mxu1 %v4969_v44  ;;  %v5025_v42 = vpack.c.bf16 %v3295_v41, %v3294_v39 }
 0x31f   : > { %4972 = vmatpush3.bf16.msra.mxu1 %v4969_v44  ;;  %v3297_v44 = vld [vmem:[#allocation12 + $0x3c8] sm:$0xff] }
 0x320   : > { %4974 = vmatprep.subr.bf16.mxu1 %v4973_v19 }
 0x323   : > { %4976 = vmatpush3.bf16.msra.mxu1 %v4973_v19  ;;  %v3301_v19 = vld [vmem:[#allocation12 + $0x3e8] sm:$0xff] }
 0x324   : > { %4978 = vmatprep.subr.bf16.mxu1 %v4977_v51 }
 0x327   : > { %4980 = vmatpush3.bf16.msra.mxu1 %v4977_v51  ;;  %v3426_v51 = vld [vmem:[#allocation12 + $0x400] sm:$0xff] }
 0x328   : > { %4982 = vmatprep.subr.bf16.mxu1 %v4981_v0  ;;  %v5045_v57 = vpack.c.bf16 %v3427_v55, %v3426_v51 }
 0x32a   : > { %4646 = vmatmul.mubr.f32.vlgmr.msra.gmra.mrb[0].mxu1 %v6294_v59 }
 0x32b   : > { %4648 = vmatprep.mubr.f32.mxu1 %v6298_v3  ;;  %4984 = vmatpush3.bf16.msra.mxu1 %v4981_v0  ;;  %v3428_v0 = vld [vmem:[#allocation12 + $0x410] sm:$0xff] }
 0x32c   : > { %4986 = vmatprep.subr.bf16.mxu1 %v4985_v54 }
 0x32e   : > { %4649 = vmatmul.mubr.f32.gmra.mrb[2].mxu1 %v6302_v13 }
 0x32f   : > { %4651 = vmatprep.mubr.f32.mxu1 %v6305_v17  ;;  %4988 = vmatpush3.bf16.msra.mxu1 %v4985_v54  ;;  %v3431_v54 = vld [vmem:[#allocation12 + $0x428] sm:$0xff] }
 0x330   : > { %4990 = vmatprep.subr.bf16.mxu1 %v4989_v5  ;;  %v5053_v2 = vpack.c.bf16 %v3431_v54, %v3430_v63 }
 0x332   : > { %4652 = vmatmul.mubr.f32.gmra.mrb[4].mxu1 %v6308_v25 }
 0x333   : > { %4654 = vmatprep.mubr.f32.mxu1 %v6311_v27  ;;  %4992 = vmatpush3.bf16.msra.mxu1 %v4989_v5  ;;  %v3433_v5 = vld [vmem:[#allocation12 + $0x438] sm:$0xff] }
 0x334   : > { %4994 = vmatprep.subr.bf16.mxu1 %v4993_v8  ;;  %v5057_v6 = vpack.c.bf16 %v3433_v5, %v3432_v4 }
 0x336   : > { %4655 = vmatmul.mubr.f32.gmra.mrb[6].mxu1 %v6356_v14 }
 0x337   : > { %4996 = vmatpush3.bf16.msra.mxu1 %v4993_v8  ;;  %4689 = vmatprep.mubr.f32.mxu1 %v6314_v47  ;;  %v5017_v47 = vpack.c.bf16 %v3291_v33, %v3290_v32  ;;  %v3435_v8 = vld [vmem:[#allocation12 + $0x448] sm:$0xff] }
 0x338   : > { %4998 = vmatprep.subr.bf16.mxu1 %v4997_v12 }
 0x33b   : > { %5000 = vmatpush3.bf16.msra.mxu1 %v4997_v12  ;;  %v3439_v12 = vld [vmem:[#allocation12 + $0x468] sm:$0xff] }
 0x33c   : > { %5002 = vmatprep.subr.bf16.mxu1 %v5001_v20 }
 0x33f   : > { %5004 = vmatpush3.bf16.msra.mxu1 %v5001_v20 }
 0x340   : > { %5006 = vmatprep.subr.bf16.mxu1 %v5005_v23 }
 0x343   : > { %5008 = vmatpush3.bf16.msra.mxu1 %v5005_v23 }
 0x344   : > { %5010 = vmatprep.subr.bf16.mxu1 %v5009_v53 }
 0x347   : > { %5012 = vmatpush3.bf16.msra.mxu1 %v5009_v53 }
 0x348   : > { %5014 = vmatprep.subr.bf16.mxu1 %v5013_v31 }
 0x34a   : > { %4690 = vmatmul.mubr.f32.vlgmr.msra.gmra.mrb[0].mxu1 %v6317_v49  ;;  %v3148_v49 = vld [vmem:[#allocation3 + $0x90] sm:$0xff] }
 0x34b   : > { %4692 = vmatprep.mubr.f32.mxu1 %v6320_v52  ;;  %5016 = vmatpush3.bf16.msra.mxu1 %v5013_v31  ;;  %v5029_v52 = vpack.c.bf16 %v3297_v44, %v3296_v43 }
 0x34c   : > { %5018 = vmatprep.subr.bf16.mxu1 %v5017_v47 }
 0x34e   : > { %4693 = vmatmul.mubr.f32.gmra.mrb[2].mxu1 %v6323_v56  ;;  %v5033_v56 = vpack.c.bf16 %v3299_v46, %v3298_v45 }
 0x34f   : > { %4695 = vmatprep.mubr.f32.mxu1 %v6327_v58  ;;  %5020 = vmatpush3.bf16.msra.mxu1 %v5017_v47  ;;  %v3300_v58 = vld [vmem:[#allocation12 + $0x3e0] sm:$0xff] }
 0x350   : > { %5022 = vmatprep.subr.bf16.mxu1 %v5021_v40  ;;  %v5037_v30 = vpack.c.bf16 %v3301_v19, %v3300_v58 }
 0x352   : > { %4696 = vmatmul.mubr.f32.gmra.mrb[4].mxu1 %v6331_v61  ;;  %v3302_v61 = vld [vmem:[#allocation12 + $0x3f0] sm:$0xff] }
 0x353   : > { %4698 = vmatprep.mubr.f32.mxu1 %v6338_v38  ;;  %5024 = vmatpush3.bf16.msra.mxu1 %v5021_v40  ;;  %v5041_v38 = vpack.c.bf16 %v3303_v50, %v3302_v61 }
 0x354   : > { %5026 = vmatprep.subr.bf16.mxu1 %v5025_v42 }
 0x356   : > { %4699 = vmatmul.mubr.f32.gmra.mrb[6].mxu1 %v3148_v49 }
 0x357   : > { %5028 = vmatpush3.bf16.msra.mxu1 %v5025_v42  ;;  %4733 = vmatprep.mubr.f32.mxu1 %v6254_v1  ;;  %v5049_v1 = vpack.c.bf16 %v3429_v60, %v3428_v0 }
 0x358   : > { %5030 = vmatprep.subr.bf16.mxu1 %v5029_v52 }
 0x35b   : > { %5032 = vmatpush3.bf16.msra.mxu1 %v5029_v52 }
 0x35c   : > { %5034 = vmatprep.subr.bf16.mxu1 %v5033_v56 }
 0x35f   : > { %5036 = vmatpush3.bf16.msra.mxu1 %v5033_v56 }
 0x360   : > { %5038 = vmatprep.subr.bf16.mxu1 %v5037_v30 }
 0x363   : > { %5040 = vmatpush3.bf16.msra.mxu1 %v5037_v30 }
 0x364   : > { %5042 = vmatprep.subr.bf16.mxu1 %v5041_v38 }
 0x367   : > { %5044 = vmatpush3.bf16.msra.mxu1 %v5041_v38 }
 0x368   : > { %5046 = vmatprep.subr.bf16.mxu1 %v5045_v57 }
 0x36a   : > { %4734 = vmatmul.mubr.f32.vlgmr.msra.gmra.mrb[0].mxu1 %v6250_v62  ;;  %v3286_v62 = vld [vmem:[#allocation3 + $0x91] sm:$0xff] }
 0x36b   : > { %4736 = vmatprep.mubr.f32.mxu1 %v6264_v15  ;;  %5048 = vmatpush3.bf16.msra.mxu1 %v5045_v57  ;;  %v5061_v15 = vpack.c.bf16 %v3435_v8, %v3434_v7 }
 0x36c   : > { %5050 = vmatprep.subr.bf16.mxu1 %v5049_v1 }
 0x36e   : > { %4737 = vmatmul.mubr.f32.gmra.mrb[2].mxu1 %v6260_v11  ;;  %v5065_v11 = vpack.c.bf16 %v3437_v10, %v3436_v9 }
 0x36f   : > { %4739 = vmatprep.mubr.f32.mxu1 %v6274_v35  ;;  %5052 = vmatpush3.bf16.msra.mxu1 %v5049_v1  ;;  %v3438_v35 = vld [vmem:[#allocation12 + $0x460] sm:$0xff] }
 0x370   : > { %5054 = vmatprep.subr.bf16.mxu1 %v5053_v2  ;;  %v5069_v16 = vpack.c.bf16 %v3439_v12, %v3438_v35 }
 0x372   : > { %4740 = vmatmul.mubr.f32.gmra.mrb[4].mxu1 %v6272_v34  ;;  %v3440_v34 = vld [vmem:[#allocation12 + $0x470] sm:$0xff] }
 0x373   : > { %4742 = vmatprep.mubr.f32.mxu1 %v6282_v48  ;;  %5056 = vmatpush3.bf16.msra.mxu1 %v5053_v2  ;;  %v5073_v48 = vpack.c.bf16 %v3441_v18, %v3440_v34 }
 0x374   : > { %5058 = vmatprep.subr.bf16.mxu1 %v5057_v6 }
 0x376   : > { %4743 = vmatmul.mubr.f32.gmra.mrb[6].mxu1 %v3286_v62 }
 0x377   : > { %5060 = vmatpush3.bf16.msra.mxu1 %v5057_v6  ;;  %4777 = vmatprep.mubr.f32.mxu1 %v6294_v59  ;;  %v3424_v59 = vld [vmem:[#allocation3 + $0x92] sm:$0xff] }
 0x378   : > { %5062 = vmatprep.subr.bf16.mxu1 %v5061_v15 }
 0x37b   : > { %5064 = vmatpush3.bf16.msra.mxu1 %v5061_v15 }
 0x37c   : > { %5066 = vmatprep.subr.bf16.mxu1 %v5065_v11 }
 0x37f   : > { %5068 = vmatpush3.bf16.msra.mxu1 %v5065_v11 }
 0x380   : > { %5070 = vmatprep.subr.bf16.mxu1 %v5069_v16 }
 0x383   : > { %5072 = vmatpush3.bf16.msra.mxu1 %v5069_v16 }
 0x384   : > { %5074 = vmatprep.subr.bf16.mxu1 %v5073_v48 }
 0x387   : > { %5076 = vmatpush3.bf16.msra.mxu1 %v5073_v48 }
 0x38a   : > { %4778 = vmatmul.mubr.f32.vlgmr.msra.gmra.mrb[0].mxu1 %v6298_v3 }
 0x38b   : > { %4780 = vmatprep.mubr.f32.mxu1 %v6302_v13 }
 0x38e   : > { %4781 = vmatmul.mubr.f32.gmra.mrb[2].mxu1 %v6305_v17  ;;  %v3912_v17 = vld [vmem:[%s6468_s7] ss:$0 sm:$0xff] }
 0x38f   : > { %4783 = vmatprep.mubr.f32.mxu1 %v6308_v25 }
 0x392   : > { %4784 = vmatmul.mubr.f32.gmra.mrb[4].mxu1 %v6311_v27 }
 0x393   : > { %4786 = vmatprep.mubr.f32.mxu1 %v6356_v14  ;;  %v3913_v14 = vld [vmem:[%s6469_s8] ss:$0 sm:$0xff] }
 0x396   : > { %4787 = vmatmul.mubr.f32.gmra.mrb[6].mxu1 %v3424_v59 }
 0x3b5   : > { %v4471_v20 = vpop.f32.mrb[10].mxu0 }
 0x3b6   : > { %v2548_v21 = vpop.f32.mrb[11].mxu0 }
 0x3b9   : > { %v4474_v22 = vpop.f32.mrb[12].mxu0 }
 0x3ba   : > { %v2558_v23 = vpop.f32.mrb[13].mxu0 }
 0x3bd   : > { %v4477_v24 = vpop.f32.mrb[14].mxu0 }
 0x3be   : > { %v2568_v26 = vpop.f32.mrb[15].mxu0 }
 0x3c1   : > { %v4480_v3 = vpop.f32.mrb[16].mxu0 }
 0x3c2   : > { %v2578_v53 = vpop.f32.mrb[17].mxu0 }
 0x45d   : > { %v4779_v13 = vpop.f32.mrb[0].mxu1 }
 0x45e   : > { %v5077_v25 = vadd.f32 %v4779_v13, %v4471_v20  ;;  %v3508_v27 = vpop.f32.mrb[1].mxu1 }
 0x45f   : > { %v5078_v28 = vadd.f32 %v3508_v27, %v2548_v21 }
 0x460   : > { %v3563_v29 = vmul.f32 %v5077_v25, %v3912_v17 }
 0x461   : > { %v3562_v31 = vmul.f32 %v5078_v28, %v3912_v17  ;;  %v4782_v32 = vpop.f32.mrb[2].mxu1 }
 0x462   : > { %v3578_v33 = vadd.f32 %v3913_v14, %v3563_v29  ;;  %v5079_v47 = vadd.f32 %v4782_v32, %v4474_v22  ;;  %v3518_v36 = vpop.f32.mrb[3].mxu1 }
 0x463   : > { %v3577_v37 = vadd.f32 %v3913_v14, %v3562_v31  ;;  %v5080_v40 = vadd.f32 %v3518_v36, %v2558_v23 }
 0x464   : > { %vm3586_vm13 = vcmp.gt.f32.partialorder %v3578_v33, 0.0  ;;  %v3594_v39 = vmul.f32 0.01, %v3578_v33  ;;  %v3565_v41 = vmul.f32 %v5079_v47, %v3912_v17 }
 0x465   : > { %vm3585_vm15 = vcmp.gt.f32.partialorder %v3577_v37, 0.0  ;;  %v3593_v42 = vmul.f32 0.01, %v3577_v37  ;;  %v3564_v43 = vmul.f32 %v5080_v40, %v3912_v17  ;;  %v4785_v44 = vpop.f32.mrb[4].mxu1 }
 0x466   : > { %v3602_v49 = vsel %vm3586_vm13, %v3578_v33, %v3594_v39  ;;  %v3580_v52 = vadd.f32 %v3913_v14, %v3565_v41  ;;  %v5081_v45 = vadd.f32 %v4785_v44, %v4477_v24  ;;  %v3528_v46 = vpop.f32.mrb[5].mxu1 }
 0x467   : > { %3611 = vst.msk [vmem:[%s6387_s29 + $0x8] sm:$0xff] %vm3609_vm14, %v3602_v49  ;;  %v3601_v56 = vsel %vm3585_vm15, %v3577_v37, %v3593_v42  ;;  %v3579_v58 = vadd.f32 %v3913_v14, %v3564_v43  ;;  %v5082_v19 = vadd.f32 %v3528_v46, %v2568_v26 }
 0x468   : > { %3610 = vst.msk [vmem:[%s6387_s29] sm:$0xff] %vm3609_vm14, %v3601_v56  ;;  %vm3588_vm0 = vcmp.gt.f32.partialorder %v3580_v52, 0.0  ;;  %v3596_v30 = vmul.f32 0.01, %v3580_v52  ;;  %v3567_v61 = vmul.f32 %v5081_v45, %v3912_v17 }
 0x469   : > { %vm3587_vm1 = vcmp.gt.f32.partialorder %v3579_v58, 0.0  ;;  %v3595_v50 = vmul.f32 0.01, %v3579_v58  ;;  %v3566_v38 = vmul.f32 %v5082_v19, %v3912_v17  ;;  %v4788_v51 = vpop.f32.mrb[6].mxu1 }
 0x46a   : > { %v3604_v55 = vsel %vm3588_vm0, %v3580_v52, %v3596_v30  ;;  %v3582_v57 = vadd.f32 %v3913_v14, %v3567_v61  ;;  %v5083_v0 = vadd.f32 %v4788_v51, %v4480_v3  ;;  %v3538_v60 = vpop.f32.mrb[7].mxu1 }
 0x46b   : > { %3613 = vst.msk [vmem:[%s6387_s29 + $0x18] sm:$0xff] %vm3609_vm14, %v3604_v55  ;;  %v3603_v1 = vsel %vm3587_vm1, %v3579_v58, %v3595_v50  ;;  %v3581_v63 = vadd.f32 %v3913_v14, %v3566_v38  ;;  %v5084_v54 = vadd.f32 %v3538_v60, %v2578_v53 }
 0x46c   : > { %3612 = vst.msk [vmem:[%s6387_s29 + $0x10] sm:$0xff] %vm3609_vm14, %v3603_v1  ;;  %vm3590_vm2 = vcmp.gt.f32.partialorder %v3582_v57, 0.0  ;;  %v3598_v2 = vmul.f32 0.01, %v3582_v57  ;;  %v3569_v4 = vmul.f32 %v5083_v0, %v3912_v17 }
 0x46d   : > { %vm3589_vm3 = vcmp.gt.f32.partialorder %v3581_v63, 0.0  ;;  %v3597_v5 = vmul.f32 0.01, %v3581_v63  ;;  %v3568_v6 = vmul.f32 %v5084_v54, %v3912_v17 }
 0x46e   : > { %v3606_v7 = vsel %vm3590_vm2, %v3582_v57, %v3598_v2  ;;  %v3584_v8 = vadd.f32 %v3913_v14, %v3569_v4 }
 0x46f   : > { %3615 = vst.msk [vmem:[%s6387_s29 + $0x28] sm:$0xff] %vm3609_vm14, %v3606_v7  ;;  %v3605_v62 = vsel %vm3589_vm3, %v3581_v63, %v3597_v5  ;;  %v3583_v15 = vadd.f32 %v3913_v14, %v3568_v6 }
 0x470   : > { %3614 = vst.msk [vmem:[%s6387_s29 + $0x20] sm:$0xff] %vm3609_vm14, %v3605_v62  ;;  %vm3592_vm4 = vcmp.gt.f32.partialorder %v3584_v8, 0.0  ;;  %v3600_v9 = vmul.f32 0.01, %v3584_v8 }
 0x471   : > { %vm3591_vm5 = vcmp.gt.f32.partialorder %v3583_v15, 0.0  ;;  %v3599_v10 = vmul.f32 0.01, %v3583_v15 }
 0x472   : > { %v3608_v11 = vsel %vm3592_vm4, %v3584_v8, %v3600_v9 }
 0x473   : > { %3617 = vst.msk [vmem:[%s6387_s29 + $0x38] sm:$0xff] %vm3609_vm14, %v3608_v11  ;;  %v3607_v35 = vsel %vm3591_vm5, %v3583_v15, %v3599_v10 }
 0x474   : > { %3616 = vst.msk [vmem:[%s6387_s29 + $0x30] sm:$0xff] %vm3609_vm14, %v3607_v35 }
 0x475   : > { %5481 = shalt.err (!%p5478_p9)
}
 0x476   : > { %s5482_s21 = scalar_lea.hbm %s6406_s25, 1024  ;;  %s5486_s1 = scalar_lea.hbm %s6530_s3, 2048 }
 0x477   : > { %p5483_p6 = scmp.ne.s32.totalorder %s6406_s25, %s5482_s21  ;;  %p5487_p3 = scmp.lt.u32.totalorder %s6406_s25, %s6530_s3 }
 0x478   : > { %p5488_p7 = scmp.lt.u32.totalorder %s5486_s1, %s5482_s21  ;;  %p5490_p2 = scmp.lt.u32.totalorder %s5482_s21, %s6406_s25 }
 0x479   : > { %p5484_p4 = pnand %p5483_p6, %p6531_p11 }
 0x47a   : > { %p5489_p12 = por %p5488_p7, %p5487_p3 }
 0x47b   : > { %p5485_p10 = pneg %p5484_p4 }
 0x47c   : > { %p5491_p0 = por %p5490_p2, %p5489_p12 }
 0x47e   : > { %p5492_p8 = pnand %p5491_p0, %p5485_p10 }
 0x480   : > { %5495 = shalt.err (!%p5492_p8)
}
 0x481   : > { %s5572_s19 = smov 128   ;;  %s5573_s30 = smov 8  }
 0x482   : > { %5235 = dma.vmem_to_hbm [thread:$0]  (%p6531_p11), %s6408_s22, 1024, %s6406_s25, %s3619_s16, %s5572_s19, %s5572_s19, %s5573_s30  }
 0x483 PF: > { %s6532_s29 = sld [smem:[#allocation18_spill]]  ;;  %s6533_s24 = sld [smem:[#allocation24_spill]] }
 0x484   : > { %s6534_s28 = sld [smem:[#allocation22_spill]] }
 0x489   : > { %s3649_s11 = sand.u32 1, %s6532_s29   ;;  %p6535_p1 = scmp.ne.s32.totalorder %s6533_s24, 0 }
 0x48a   : > { %p6536_p13 = scmp.ge.s32.totalorder %s6534_s28, 2  ;;  %s3650_s27 = scalar_lea.sflag [#allocation6], %s3649_s11 }
 0x48c   : > { %p5255_p5 = pnand %p6536_p13, %p6535_p1 }
 0x48e   : > { %5533 = dma.done.wait (!%p5255_p5), %s3650_s27, 1024  }
 0x48f   : > { %5535 = vsyncadd (!%p5255_p5), %s3650_s27, 4294966272  ;;  %s29_s14 = sadd.s32 1, %s6534_s28   ;;  %s6537_s9 = sld [smem:[#allocation19_spill]] }
 0x490   : > { %p26_p9 = scmp.ge.s32.totalorder %s29_s14, 4   ;;  %s6538_s11 = sld [smem:[#allocation26_spill]] }
 0x491   : > { %s6539_s12 = sld [smem:[#allocation21_spill]]  ;;  %s6540_s13 = sld [smem:[#allocation25_spill]] }
 0x492   : > { %s6541_s30 = smov %s5542_s10  ;;  %28 = sbr.rel (!%p26_p9) target bundleno = 13 (0xd), region = 159 }
 0x495   : > { %s6542_s10 = smov %s6537_s9 }
 0x499   :  { %3655 = vsyncpa [#allocation5], 1 }
 0x49a   :  { %3657 = vsyncpa [#allocation5 + $0x1], 1 }
 0x49b   :  { %3658 = vsyncpa [#allocation8], 1 }
 0x49c   :  { %3660 = vsyncpa [#allocation8 + $0x1], 1 }
 0x49d   :  { %3661 = vsyncpa [#allocation11], 1 }
 0x49e   :  { %3662 = vsyncpa [#allocation6], 1 }
 0x49f   :  { %3664 = vsyncpa [#allocation6 + $0x1], 1 }

</bundles_post_ra>
